<compile_context>
chip_gen: v5e
topology: v5e:2x2
jax: 0.10.0
libtpu: 0.0.40
codegen_flags: <defaults>
</compile_context>

<pallas_src>
import numpy as np

import jax
import jax.numpy as jnp
from jax.experimental import pallas as pl
from jax.experimental.pallas import tpu as pltpu

_VMEM = pl.BlockSpec(memory_space=pltpu.MemorySpace.VMEM)

# Conv stack of the PyTorch module: (Cin, Cout, stride, relu), all 3x3 / pad 1.
_LAYERS = [
    (3, 8, 2, True),
    (8, 16, 2, True),
    (16, 32, 2, True),
    (32, 64, 2, True),
    (64, 1, 1, False),
]


def _out_hw(h, w, stride):
    return (h + 2 - 3) // stride + 1, (w + 2 - 3) // stride + 1


# ---------------------------------------------------------------------------
# The fused kernel (built per static layer plan)
# ---------------------------------------------------------------------------
def _make_kernel(plan, n_in):
    """plan: per-layer static info for layers 2..5.

    Activation layout in-kernel: (C, M) with M = N*Ho*Wo on the lane axis.
    Per layer with gather: s_ref is a lane-stacked (M_in, T*M_out) 0/1 matrix
    (one column-gather block per kept conv tap); w_ref is the matching weight
    stacked tap-major on sublanes, (T*Cout, Cin).
    """

    def kernel(*refs):
        in_refs = refs[:n_in]
        y_ref, mean_ref = refs[n_in], refs[n_in + 1]
        it = iter(in_refs)

        p1_ref, w1_ref, b1_ref = next(it), next(it), next(it)

        # --- layer 1: wrapper-built patches (27, M1); single K=27 MXU dot.
        x = jnp.dot(w1_ref[...], p1_ref[...], preferred_element_type=jnp.float32)
        x = jnp.maximum(x + b1_ref[...], 0.0)                      # (8, M1) f32

        # --- layers 2..5
        for lp in plan:
            s_ref = next(it) if lp["gather"] else None
            w_ref, b_ref = next(it), next(it)
            T, m_out, cout = lp["taps"], lp["m_out"], lp["cout"]

            if lp["gather"]:
                # One lane-dense gather matmul: (Cin, M_in) x (M_in, T*M_out).
                # 0/1 columns copy bf16 values exactly -> default MXU precision
                # is exact here; f32 accumulator via preferred_element_type.
                g = jnp.dot(x.astype(jnp.bfloat16), s_ref[...],
                            preferred_element_type=jnp.float32)
                g = g.astype(jnp.bfloat16)                         # (Cin, T*M_out)
            else:
                g = x                                              # identity tap (T == 1)

            if lp["vpu_final"]:
                # Final Cout=1 layer, single (center) identity tap: no MXU, no
                # gather -- VPU multiply + sublane reduction, full f32.
                y = jnp.sum(g.astype(jnp.float32) * w_ref[...],
                            axis=0, keepdims=True) + b_ref[...]    # (1, M_out)
            else:
                w_all = w_ref[...]                                 # (T*Cout, Cin)
                acc = jnp.zeros((cout, m_out), jnp.float32)
                for k in range(T):
                    gk = g[:, k * m_out:(k + 1) * m_out].astype(jnp.bfloat16)
                    wk = w_all[k * cout:(k + 1) * cout, :]
                    acc = acc + jnp.dot(wk, gk,
                                        preferred_element_type=jnp.float32)
                y = acc + b_ref[...]                               # (Cout, M_out)

            x = jnp.maximum(y, 0.0) if lp["relu"] else y

        y_ref[...] = x                                             # (1, M5) f32
        # Global mean fused (Cout == 1 -> mean over the M5 lane values).
        mean_ref[...] = jnp.sum(x, keepdims=True) / float(x.shape[0] * x.shape[1])

    return kernel


# ---------------------------------------------------------------------------
# Trace-time helpers (constants; no per-layer HBM traffic at runtime)
# ---------------------------------------------------------------------------
def _im2col_T(x_nhwc, stride):
    """Layer-1 patches, transposed: (9*C, N*Ho*Wo), rows ordered (kh, kw, ci)."""
    n, h, w, c = x_nhwc.shape
    ho, wo = _out_hw(h, w, stride)
    xp = jnp.pad(x_nhwc, ((0, 0), (1, 1), (1, 1), (0, 0)))
    rows = []
    for kh in range(3):
        for kw in range(3):
            t = jax.lax.slice(
                xp,
                (0, kh, kw, 0),
                (n, kh + (ho - 1) * stride + 1, kw + (wo - 1) * stride + 1, c),
                (1, stride, stride, 1),
            )                                        # (n, ho, wo, c)
            rows.append(t.reshape(n * ho * wo, c).T)
    return jnp.concatenate(rows, axis=0), (ho, wo)


def _w_wide(w_oihw):
    """PyTorch OIHW -> (Cout, 9*Cin), columns ordered (kh, kw, ci)."""
    cout = w_oihw.shape[0]
    return jnp.transpose(w_oihw, (0, 2, 3, 1)).reshape(cout, 9 * w_oihw.shape[1])


def _gather_lane_stacked(n, h, w, stride):
    """Lane-stacked 0/1 gather for a 3x3 / pad-1 conv, dead taps pruned.

    Returns (s, kept, ho, wo) with s of shape (M_in, T*M_out); block k of s
    gathers, for kept tap k, the input position feeding each output position
    (all-zero taps are dropped entirely).
    """
    ho, wo = _out_hw(h, w, stride)
    m_in, m_out = n * h * w, n * ho * wo
    blocks, kept = [], []
    for kh in range(3):
        for kw in range(3):
            s = np.zeros((m_in, m_out), np.float32)
            for b in range(n):
                for i in range(ho):
                    hi = stride * i + kh - 1
                    if not 0 <= hi < h:
                        continue
                    for j in range(wo):
                        wi = stride * j + kw - 1
                        if not 0 <= wi < w:
                            continue
                        s[(b * h + hi) * w + wi, (b * ho + i) * wo + j] = 1.0
            if s.any():
                kept.append(kh * 3 + kw)
                blocks.append(s)
    return np.concatenate(blocks, axis=1), kept, ho, wo


# ---------------------------------------------------------------------------
# Parameters + full forward
# ---------------------------------------------------------------------------
def init_params(key):
    params = []
    for i, (cin, cout, _, _) in enumerate(_LAYERS):
        kw_key, kb_key = jax.random.split(jax.random.fold_in(key, i))
        bound = 1.0 / (cin * 9) ** 0.5  # PyTorch default fan_in uniform bound
        w = jax.random.uniform(kw_key, (cout, cin, 3, 3), jnp.float32, -bound, bound)
        b = jax.random.uniform(kb_key, (cout,), jnp.float32, -bound, bound)
        params.append((w, b))
    return params


def discriminator_forward(image_nchw, params):
    """Matches Discriminator.forward: x = image - 0.5; x = model(x); return (mean(x), x)."""
    x = jnp.transpose(image_nchw, (0, 2, 3, 1)).astype(jnp.float32) - 0.5  # NHWC
    n = x.shape[0]

    # Layer-1 patches in the wrapper (tiny; fuses with the -0.5 preprocessing).
    p1, (ho, wo) = _im2col_T(x, _LAYERS[0][2])
    w1, b1 = params[0]
    args = [p1.astype(jnp.bfloat16),
            _w_wide(w1).astype(jnp.bfloat16),
            b1.reshape(-1, 1).astype(jnp.float32)]

    plan = []
    for li in range(1, len(_LAYERS)):
        cin, cout, stride, relu = _LAYERS[li]
        s_np, kept, ho, wo = _gather_lane_stacked(n, ho, wo, stride)
        m_out = n * ho * wo
        T = len(kept)
        wl, bl = params[li]
        is_last = li == len(_LAYERS) - 1

        # Single identity tap -> no gather matmul needed at all.
        gather_needed = not (T == 1 and s_np.shape == (m_out, m_out)
                             and np.array_equal(s_np, np.eye(m_out, dtype=np.float32)))
        vpu_final = is_last and (not relu) and cout == 1 and T == 1 and not gather_needed

        plan.append(dict(taps=T, m_out=m_out, cout=cout, relu=relu,
                         gather=gather_needed, vpu_final=vpu_final))

        if gather_needed:
            args.append(jnp.asarray(s_np, dtype=jnp.bfloat16))

        if vpu_final:
            kh, kw = divmod(kept[0], 3)
            w_col = jnp.transpose(wl[:, :, kh, kw]).astype(jnp.float32)   # (Cin, 1)
            args += [w_col, bl.reshape(1, 1).astype(jnp.float32)]
        else:
            # Kept taps stacked tap-major on sublanes: (T*Cout, Cin), bf16.
            w_stk = jnp.stack([wl[:, :, k // 3, k % 3] for k in kept], axis=0)
            w_stk = w_stk.reshape(T * cout, cin).astype(jnp.bfloat16)
            args += [w_stk, bl.reshape(cout, 1).astype(jnp.float32)]

    m5 = n * ho * wo
    y, mean = pl.pallas_call(
        _make_kernel(tuple(plan), len(args)),
        out_shape=(
            jax.ShapeDtypeStruct((1, m5), jnp.float32),
            jax.ShapeDtypeStruct((1, 1), jnp.float32),
        ),
        in_specs=[_VMEM] * len(args),
        out_specs=(_VMEM, _VMEM),
    )(*args)

    x_nchw = y.reshape(n, ho, wo)[:, None, :, :]  # (N, 1, Ho, Wo) like PyTorch
    return mean[0, 0], x_nchw


# ---------------------------------------------------------------------------
# Pure-JAX reference (for correctness check)
# ---------------------------------------------------------------------------
def _ref_forward(image_nchw, params):
    x = jnp.transpose(image_nchw, (0, 2, 3, 1)) - 0.5
    for i, (cin, cout, stride, relu) in enumerate(_LAYERS):
        w, b = params[i]
        x = jax.lax.conv_general_dilated(
            x,
            jnp.transpose(w, (2, 3, 1, 0)),
            (stride, stride),
            ((1, 1), (1, 1)),
            dimension_numbers=("NHWC", "HWIO", "NHWC"),
            precision=jax.lax.Precision.HIGHEST,
        ) + b
        if relu:
            x = jnp.maximum(x, 0.0)
    return jnp.mean(x), jnp.transpose(x, (0, 3, 1, 2))


if __name__ == "__main__":
    key = jax.random.PRNGKey(0)
    k_img, k_par = jax.random.split(key)

    # Small shapes consistent with the module: NCHW, 3 input channels.
    image = jax.random.uniform(k_img, (2, 3, 16, 16), dtype=jnp.float32)
    params = init_params(k_par)

    mean_out, x_out = jax.jit(discriminator_forward)(image, params)
    jax.block_until_ready((mean_out, x_out))

    # Sanity check vs. a full-f32 XLA reference.  Conv dots run on bf16 operands
    # with f32 accumulation (default MXU precision), so a small absolute noise
    # budget is allowed (outputs here are O(1e-2)).
    mean_ref, x_ref = _ref_forward(image, params)
    assert x_out.shape == x_ref.shape == (2, 1, 1, 1), x_out.shape
    tol = 2e-3
    assert float(jnp.max(jnp.abs(x_out - x_ref))) <= tol, "conv output mismatch"
    assert abs(float(mean_out) - float(mean_ref)) <= tol, "mean mismatch"

    print("KERNEL_OK")
</pallas_src>

<mosaic_0001>
module attributes {stable_mosaic.version = 11 : i64} {
  func.func @kernel(%arg0: memref<27x128xbf16, #tpu.memory_space<vmem>>, %arg1: memref<8x27xbf16, #tpu.memory_space<vmem>>, %arg2: memref<8x1xf32, #tpu.memory_space<vmem>>, %arg3: memref<128x288xbf16, #tpu.memory_space<vmem>>, %arg4: memref<144x8xbf16, #tpu.memory_space<vmem>>, %arg5: memref<16x1xf32, #tpu.memory_space<vmem>>, %arg6: memref<32x72xbf16, #tpu.memory_space<vmem>>, %arg7: memref<288x16xbf16, #tpu.memory_space<vmem>>, %arg8: memref<32x1xf32, #tpu.memory_space<vmem>>, %arg9: memref<8x8xbf16, #tpu.memory_space<vmem>>, %arg10: memref<256x32xbf16, #tpu.memory_space<vmem>>, %arg11: memref<64x1xf32, #tpu.memory_space<vmem>>, %arg12: memref<64x1xf32, #tpu.memory_space<vmem>>, %arg13: memref<1x1xf32, #tpu.memory_space<vmem>>, %arg14: memref<1x2xf32, #tpu.memory_space<vmem>>, %arg15: memref<1x1xf32, #tpu.memory_space<vmem>>) attributes {dimension_semantics = [], scalar_prefetch = 0 : i64, scratch_operands = 0 : i64, tpu.core_type = #tpu.core_type<tc>} {
    %c0 = arith.constant 0 : index
    %c0_0 = arith.constant 0 : index
    %0 = vector.load %arg1[%c0, %c0_0] : memref<8x27xbf16, #tpu.memory_space<vmem>>, vector<8x27xbf16>
    %c0_1 = arith.constant 0 : index
    %c0_2 = arith.constant 0 : index
    %1 = vector.load %arg0[%c0_1, %c0_2] : memref<27x128xbf16, #tpu.memory_space<vmem>>, vector<27x128xbf16>
    %cst = arith.constant dense<0.000000e+00> : vector<8x128xf32>
    %2 = tpu.matmul %0, %1, %cst {dimension_numbers = #tpu.dot_dimension_numbers<[1], [0], [0], [1], [0, 0, 1, 1], [], []>} : vector<8x27xbf16>, vector<27x128xbf16>, vector<8x128xf32> -> vector<8x128xf32>
    %c0_3 = arith.constant 0 : index
    %c0_4 = arith.constant 0 : index
    %3 = vector.load %arg2[%c0_3, %c0_4] : memref<8x1xf32, #tpu.memory_space<vmem>>, vector<8x1xf32>
    %4 = vector.broadcast %3 : vector<8x1xf32> to vector<8x128xf32>
    %5 = arith.addf %2, %4 : vector<8x128xf32>
    %cst_5 = arith.constant 0.000000e+00 : f32
    %6 = vector.broadcast %cst_5 : f32 to vector<8x128xf32>
    %7 = arith.maximumf %5, %6 : vector<8x128xf32>
    %8 = arith.truncf %7 : vector<8x128xf32> to vector<8x128xbf16>
    %c0_6 = arith.constant 0 : index
    %c0_7 = arith.constant 0 : index
    %9 = vector.load %arg3[%c0_6, %c0_7] : memref<128x288xbf16, #tpu.memory_space<vmem>>, vector<128x288xbf16>
    %cst_8 = arith.constant dense<0.000000e+00> : vector<8x288xf32>
    %10 = tpu.matmul %8, %9, %cst_8 {dimension_numbers = #tpu.dot_dimension_numbers<[1], [0], [0], [1], [0, 0, 1, 1], [], []>} : vector<8x128xbf16>, vector<128x288xbf16>, vector<8x288xf32> -> vector<8x288xf32>
    %11 = arith.truncf %10 : vector<8x288xf32> to vector<8x288xbf16>
    %c0_9 = arith.constant 0 : index
    %c0_10 = arith.constant 0 : index
    %12 = vector.load %arg4[%c0_9, %c0_10] : memref<144x8xbf16, #tpu.memory_space<vmem>>, vector<144x8xbf16>
    %cst_11 = arith.constant 0.000000e+00 : f32
    %13 = vector.broadcast %cst_11 : f32 to vector<16x32xf32>
    %14 = vector.extract_strided_slice %11 {offsets = [0, 0], sizes = [8, 32], strides = [1, 1]} : vector<8x288xbf16> to vector<8x32xbf16>
    %15 = vector.extract_strided_slice %12 {offsets = [0, 0], sizes = [16, 8], strides = [1, 1]} : vector<144x8xbf16> to vector<16x8xbf16>
    %cst_12 = arith.constant dense<0.000000e+00> : vector<16x32xf32>
    %16 = tpu.matmul %15, %14, %cst_12 {dimension_numbers = #tpu.dot_dimension_numbers<[1], [0], [0], [1], [0, 0, 1, 1], [], []>} : vector<16x8xbf16>, vector<8x32xbf16>, vector<16x32xf32> -> vector<16x32xf32>
    %17 = arith.addf %13, %16 : vector<16x32xf32>
    %18 = vector.extract_strided_slice %11 {offsets = [0, 32], sizes = [8, 32], strides = [1, 1]} : vector<8x288xbf16> to vector<8x32xbf16>
    %19 = vector.extract_strided_slice %12 {offsets = [16, 0], sizes = [16, 8], strides = [1, 1]} : vector<144x8xbf16> to vector<16x8xbf16>
    %cst_13 = arith.constant dense<0.000000e+00> : vector<16x32xf32>
    %20 = tpu.matmul %19, %18, %cst_13 {dimension_numbers = #tpu.dot_dimension_numbers<[1], [0], [0], [1], [0, 0, 1, 1], [], []>} : vector<16x8xbf16>, vector<8x32xbf16>, vector<16x32xf32> -> vector<16x32xf32>
    %21 = arith.addf %17, %20 : vector<16x32xf32>
    %22 = vector.extract_strided_slice %11 {offsets = [0, 64], sizes = [8, 32], strides = [1, 1]} : vector<8x288xbf16> to vector<8x32xbf16>
    %23 = vector.extract_strided_slice %12 {offsets = [32, 0], sizes = [16, 8], strides = [1, 1]} : vector<144x8xbf16> to vector<16x8xbf16>
    %cst_14 = arith.constant dense<0.000000e+00> : vector<16x32xf32>
    %24 = tpu.matmul %23, %22, %cst_14 {dimension_numbers = #tpu.dot_dimension_numbers<[1], [0], [0], [1], [0, 0, 1, 1], [], []>} : vector<16x8xbf16>, vector<8x32xbf16>, vector<16x32xf32> -> vector<16x32xf32>
    %25 = arith.addf %21, %24 : vector<16x32xf32>
    %26 = vector.extract_strided_slice %11 {offsets = [0, 96], sizes = [8, 32], strides = [1, 1]} : vector<8x288xbf16> to vector<8x32xbf16>
    %27 = vector.extract_strided_slice %12 {offsets = [48, 0], sizes = [16, 8], strides = [1, 1]} : vector<144x8xbf16> to vector<16x8xbf16>
    %cst_15 = arith.constant dense<0.000000e+00> : vector<16x32xf32>
    %28 = tpu.matmul %27, %26, %cst_15 {dimension_numbers = #tpu.dot_dimension_numbers<[1], [0], [0], [1], [0, 0, 1, 1], [], []>} : vector<16x8xbf16>, vector<8x32xbf16>, vector<16x32xf32> -> vector<16x32xf32>
    %29 = arith.addf %25, %28 : vector<16x32xf32>
    %30 = vector.extract_strided_slice %11 {offsets = [0, 128], sizes = [8, 32], strides = [1, 1]} : vector<8x288xbf16> to vector<8x32xbf16>
    %31 = vector.extract_strided_slice %12 {offsets = [64, 0], sizes = [16, 8], strides = [1, 1]} : vector<144x8xbf16> to vector<16x8xbf16>
    %cst_16 = arith.constant dense<0.000000e+00> : vector<16x32xf32>
    %32 = tpu.matmul %31, %30, %cst_16 {dimension_numbers = #tpu.dot_dimension_numbers<[1], [0], [0], [1], [0, 0, 1, 1], [], []>} : vector<16x8xbf16>, vector<8x32xbf16>, vector<16x32xf32> -> vector<16x32xf32>
    %33 = arith.addf %29, %32 : vector<16x32xf32>
    %34 = vector.extract_strided_slice %11 {offsets = [0, 160], sizes = [8, 32], strides = [1, 1]} : vector<8x288xbf16> to vector<8x32xbf16>
    %35 = vector.extract_strided_slice %12 {offsets = [80, 0], sizes = [16, 8], strides = [1, 1]} : vector<144x8xbf16> to vector<16x8xbf16>
    %cst_17 = arith.constant dense<0.000000e+00> : vector<16x32xf32>
    %36 = tpu.matmul %35, %34, %cst_17 {dimension_numbers = #tpu.dot_dimension_numbers<[1], [0], [0], [1], [0, 0, 1, 1], [], []>} : vector<16x8xbf16>, vector<8x32xbf16>, vector<16x32xf32> -> vector<16x32xf32>
    %37 = arith.addf %33, %36 : vector<16x32xf32>
    %38 = vector.extract_strided_slice %11 {offsets = [0, 192], sizes = [8, 32], strides = [1, 1]} : vector<8x288xbf16> to vector<8x32xbf16>
    %39 = vector.extract_strided_slice %12 {offsets = [96, 0], sizes = [16, 8], strides = [1, 1]} : vector<144x8xbf16> to vector<16x8xbf16>
    %cst_18 = arith.constant dense<0.000000e+00> : vector<16x32xf32>
    %40 = tpu.matmul %39, %38, %cst_18 {dimension_numbers = #tpu.dot_dimension_numbers<[1], [0], [0], [1], [0, 0, 1, 1], [], []>} : vector<16x8xbf16>, vector<8x32xbf16>, vector<16x32xf32> -> vector<16x32xf32>
    %41 = arith.addf %37, %40 : vector<16x32xf32>
    %42 = vector.extract_strided_slice %11 {offsets = [0, 224], sizes = [8, 32], strides = [1, 1]} : vector<8x288xbf16> to vector<8x32xbf16>
    %43 = vector.extract_strided_slice %12 {offsets = [112, 0], sizes = [16, 8], strides = [1, 1]} : vector<144x8xbf16> to vector<16x8xbf16>
    %cst_19 = arith.constant dense<0.000000e+00> : vector<16x32xf32>
    %44 = tpu.matmul %43, %42, %cst_19 {dimension_numbers = #tpu.dot_dimension_numbers<[1], [0], [0], [1], [0, 0, 1, 1], [], []>} : vector<16x8xbf16>, vector<8x32xbf16>, vector<16x32xf32> -> vector<16x32xf32>
    %45 = arith.addf %41, %44 : vector<16x32xf32>
    %46 = vector.extract_strided_slice %11 {offsets = [0, 256], sizes = [8, 32], strides = [1, 1]} : vector<8x288xbf16> to vector<8x32xbf16>
    %47 = vector.extract_strided_slice %12 {offsets = [128, 0], sizes = [16, 8], strides = [1, 1]} : vector<144x8xbf16> to vector<16x8xbf16>
    %cst_20 = arith.constant dense<0.000000e+00> : vector<16x32xf32>
    %48 = tpu.matmul %47, %46, %cst_20 {dimension_numbers = #tpu.dot_dimension_numbers<[1], [0], [0], [1], [0, 0, 1, 1], [], []>} : vector<16x8xbf16>, vector<8x32xbf16>, vector<16x32xf32> -> vector<16x32xf32>
    %49 = arith.addf %45, %48 : vector<16x32xf32>
    %c0_21 = arith.constant 0 : index
    %c0_22 = arith.constant 0 : index
    %50 = vector.load %arg5[%c0_21, %c0_22] : memref<16x1xf32, #tpu.memory_space<vmem>>, vector<16x1xf32>
    %51 = vector.broadcast %50 : vector<16x1xf32> to vector<16x32xf32>
    %52 = arith.addf %49, %51 : vector<16x32xf32>
    %cst_23 = arith.constant 0.000000e+00 : f32
    %53 = vector.broadcast %cst_23 : f32 to vector<16x32xf32>
    %54 = arith.maximumf %52, %53 : vector<16x32xf32>
    %55 = arith.truncf %54 : vector<16x32xf32> to vector<16x32xbf16>
    %c0_24 = arith.constant 0 : index
    %c0_25 = arith.constant 0 : index
    %56 = vector.load %arg6[%c0_24, %c0_25] : memref<32x72xbf16, #tpu.memory_space<vmem>>, vector<32x72xbf16>
    %cst_26 = arith.constant dense<0.000000e+00> : vector<16x72xf32>
    %57 = tpu.matmul %55, %56, %cst_26 {dimension_numbers = #tpu.dot_dimension_numbers<[1], [0], [0], [1], [0, 0, 1, 1], [], []>} : vector<16x32xbf16>, vector<32x72xbf16>, vector<16x72xf32> -> vector<16x72xf32>
    %58 = arith.truncf %57 : vector<16x72xf32> to vector<16x72xbf16>
    %c0_27 = arith.constant 0 : index
    %c0_28 = arith.constant 0 : index
    %59 = vector.load %arg7[%c0_27, %c0_28] : memref<288x16xbf16, #tpu.memory_space<vmem>>, vector<288x16xbf16>
    %cst_29 = arith.constant 0.000000e+00 : f32
    %60 = vector.broadcast %cst_29 : f32 to vector<32x8xf32>
    %61 = vector.extract_strided_slice %58 {offsets = [0, 0], sizes = [16, 8], strides = [1, 1]} : vector<16x72xbf16> to vector<16x8xbf16>
    %62 = vector.extract_strided_slice %59 {offsets = [0, 0], sizes = [32, 16], strides = [1, 1]} : vector<288x16xbf16> to vector<32x16xbf16>
    %cst_30 = arith.constant dense<0.000000e+00> : vector<32x8xf32>
    %63 = tpu.matmul %62, %61, %cst_30 {dimension_numbers = #tpu.dot_dimension_numbers<[1], [0], [0], [1], [0, 0, 1, 1], [], []>} : vector<32x16xbf16>, vector<16x8xbf16>, vector<32x8xf32> -> vector<32x8xf32>
    %64 = arith.addf %60, %63 : vector<32x8xf32>
    %65 = vector.extract_strided_slice %58 {offsets = [0, 8], sizes = [16, 8], strides = [1, 1]} : vector<16x72xbf16> to vector<16x8xbf16>
    %66 = vector.extract_strided_slice %59 {offsets = [32, 0], sizes = [32, 16], strides = [1, 1]} : vector<288x16xbf16> to vector<32x16xbf16>
    %cst_31 = arith.constant dense<0.000000e+00> : vector<32x8xf32>
    %67 = tpu.matmul %66, %65, %cst_31 {dimension_numbers = #tpu.dot_dimension_numbers<[1], [0], [0], [1], [0, 0, 1, 1], [], []>} : vector<32x16xbf16>, vector<16x8xbf16>, vector<32x8xf32> -> vector<32x8xf32>
    %68 = arith.addf %64, %67 : vector<32x8xf32>
    %69 = vector.extract_strided_slice %58 {offsets = [0, 16], sizes = [16, 8], strides = [1, 1]} : vector<16x72xbf16> to vector<16x8xbf16>
    %70 = vector.extract_strided_slice %59 {offsets = [64, 0], sizes = [32, 16], strides = [1, 1]} : vector<288x16xbf16> to vector<32x16xbf16>
    %cst_32 = arith.constant dense<0.000000e+00> : vector<32x8xf32>
    %71 = tpu.matmul %70, %69, %cst_32 {dimension_numbers = #tpu.dot_dimension_numbers<[1], [0], [0], [1], [0, 0, 1, 1], [], []>} : vector<32x16xbf16>, vector<16x8xbf16>, vector<32x8xf32> -> vector<32x8xf32>
    %72 = arith.addf %68, %71 : vector<32x8xf32>
    %73 = vector.extract_strided_slice %58 {offsets = [0, 24], sizes = [16, 8], strides = [1, 1]} : vector<16x72xbf16> to vector<16x8xbf16>
    %74 = vector.extract_strided_slice %59 {offsets = [96, 0], sizes = [32, 16], strides = [1, 1]} : vector<288x16xbf16> to vector<32x16xbf16>
    %cst_33 = arith.constant dense<0.000000e+00> : vector<32x8xf32>
    %75 = tpu.matmul %74, %73, %cst_33 {dimension_numbers = #tpu.dot_dimension_numbers<[1], [0], [0], [1], [0, 0, 1, 1], [], []>} : vector<32x16xbf16>, vector<16x8xbf16>, vector<32x8xf32> -> vector<32x8xf32>
    %76 = arith.addf %72, %75 : vector<32x8xf32>
    %77 = vector.extract_strided_slice %58 {offsets = [0, 32], sizes = [16, 8], strides = [1, 1]} : vector<16x72xbf16> to vector<16x8xbf16>
    %78 = vector.extract_strided_slice %59 {offsets = [128, 0], sizes = [32, 16], strides = [1, 1]} : vector<288x16xbf16> to vector<32x16xbf16>
    %cst_34 = arith.constant dense<0.000000e+00> : vector<32x8xf32>
    %79 = tpu.matmul %78, %77, %cst_34 {dimension_numbers = #tpu.dot_dimension_numbers<[1], [0], [0], [1], [0, 0, 1, 1], [], []>} : vector<32x16xbf16>, vector<16x8xbf16>, vector<32x8xf32> -> vector<32x8xf32>
    %80 = arith.addf %76, %79 : vector<32x8xf32>
    %81 = vector.extract_strided_slice %58 {offsets = [0, 40], sizes = [16, 8], strides = [1, 1]} : vector<16x72xbf16> to vector<16x8xbf16>
    %82 = vector.extract_strided_slice %59 {offsets = [160, 0], sizes = [32, 16], strides = [1, 1]} : vector<288x16xbf16> to vector<32x16xbf16>
    %cst_35 = arith.constant dense<0.000000e+00> : vector<32x8xf32>
    %83 = tpu.matmul %82, %81, %cst_35 {dimension_numbers = #tpu.dot_dimension_numbers<[1], [0], [0], [1], [0, 0, 1, 1], [], []>} : vector<32x16xbf16>, vector<16x8xbf16>, vector<32x8xf32> -> vector<32x8xf32>
    %84 = arith.addf %80, %83 : vector<32x8xf32>
    %85 = vector.extract_strided_slice %58 {offsets = [0, 48], sizes = [16, 8], strides = [1, 1]} : vector<16x72xbf16> to vector<16x8xbf16>
    %86 = vector.extract_strided_slice %59 {offsets = [192, 0], sizes = [32, 16], strides = [1, 1]} : vector<288x16xbf16> to vector<32x16xbf16>
    %cst_36 = arith.constant dense<0.000000e+00> : vector<32x8xf32>
    %87 = tpu.matmul %86, %85, %cst_36 {dimension_numbers = #tpu.dot_dimension_numbers<[1], [0], [0], [1], [0, 0, 1, 1], [], []>} : vector<32x16xbf16>, vector<16x8xbf16>, vector<32x8xf32> -> vector<32x8xf32>
    %88 = arith.addf %84, %87 : vector<32x8xf32>
    %89 = vector.extract_strided_slice %58 {offsets = [0, 56], sizes = [16, 8], strides = [1, 1]} : vector<16x72xbf16> to vector<16x8xbf16>
    %90 = vector.extract_strided_slice %59 {offsets = [224, 0], sizes = [32, 16], strides = [1, 1]} : vector<288x16xbf16> to vector<32x16xbf16>
    %cst_37 = arith.constant dense<0.000000e+00> : vector<32x8xf32>
    %91 = tpu.matmul %90, %89, %cst_37 {dimension_numbers = #tpu.dot_dimension_numbers<[1], [0], [0], [1], [0, 0, 1, 1], [], []>} : vector<32x16xbf16>, vector<16x8xbf16>, vector<32x8xf32> -> vector<32x8xf32>
    %92 = arith.addf %88, %91 : vector<32x8xf32>
    %93 = vector.extract_strided_slice %58 {offsets = [0, 64], sizes = [16, 8], strides = [1, 1]} : vector<16x72xbf16> to vector<16x8xbf16>
    %94 = vector.extract_strided_slice %59 {offsets = [256, 0], sizes = [32, 16], strides = [1, 1]} : vector<288x16xbf16> to vector<32x16xbf16>
    %cst_38 = arith.constant dense<0.000000e+00> : vector<32x8xf32>
    %95 = tpu.matmul %94, %93, %cst_38 {dimension_numbers = #tpu.dot_dimension_numbers<[1], [0], [0], [1], [0, 0, 1, 1], [], []>} : vector<32x16xbf16>, vector<16x8xbf16>, vector<32x8xf32> -> vector<32x8xf32>
    %96 = arith.addf %92, %95 : vector<32x8xf32>
    %c0_39 = arith.constant 0 : index
    %c0_40 = arith.constant 0 : index
    %97 = vector.load %arg8[%c0_39, %c0_40] : memref<32x1xf32, #tpu.memory_space<vmem>>, vector<32x1xf32>
    %98 = vector.broadcast %97 : vector<32x1xf32> to vector<32x8xf32>
    %99 = arith.addf %96, %98 : vector<32x8xf32>
    %cst_41 = arith.constant 0.000000e+00 : f32
    %100 = vector.broadcast %cst_41 : f32 to vector<32x8xf32>
    %101 = arith.maximumf %99, %100 : vector<32x8xf32>
    %102 = arith.truncf %101 : vector<32x8xf32> to vector<32x8xbf16>
    %c0_42 = arith.constant 0 : index
    %c0_43 = arith.constant 0 : index
    %103 = vector.load %arg9[%c0_42, %c0_43] : memref<8x8xbf16, #tpu.memory_space<vmem>>, vector<8x8xbf16>
    %cst_44 = arith.constant dense<0.000000e+00> : vector<32x8xf32>
    %104 = tpu.matmul %102, %103, %cst_44 {dimension_numbers = #tpu.dot_dimension_numbers<[1], [0], [0], [1], [0, 0, 1, 1], [], []>} : vector<32x8xbf16>, vector<8x8xbf16>, vector<32x8xf32> -> vector<32x8xf32>
    %105 = arith.truncf %104 : vector<32x8xf32> to vector<32x8xbf16>
    %c0_45 = arith.constant 0 : index
    %c0_46 = arith.constant 0 : index
    %106 = vector.load %arg10[%c0_45, %c0_46] : memref<256x32xbf16, #tpu.memory_space<vmem>>, vector<256x32xbf16>
    %cst_47 = arith.constant 0.000000e+00 : f32
    %107 = vector.broadcast %cst_47 : f32 to vector<64x2xf32>
    %108 = vector.extract_strided_slice %105 {offsets = [0, 0], sizes = [32, 2], strides = [1, 1]} : vector<32x8xbf16> to vector<32x2xbf16>
    %109 = vector.extract_strided_slice %106 {offsets = [0, 0], sizes = [64, 32], strides = [1, 1]} : vector<256x32xbf16> to vector<64x32xbf16>
    %cst_48 = arith.constant dense<0.000000e+00> : vector<64x2xf32>
    %110 = tpu.matmul %109, %108, %cst_48 {dimension_numbers = #tpu.dot_dimension_numbers<[1], [0], [0], [1], [0, 0, 1, 1], [], []>} : vector<64x32xbf16>, vector<32x2xbf16>, vector<64x2xf32> -> vector<64x2xf32>
    %111 = arith.addf %107, %110 : vector<64x2xf32>
    %112 = vector.extract_strided_slice %105 {offsets = [0, 2], sizes = [32, 2], strides = [1, 1]} : vector<32x8xbf16> to vector<32x2xbf16>
    %113 = vector.extract_strided_slice %106 {offsets = [64, 0], sizes = [64, 32], strides = [1, 1]} : vector<256x32xbf16> to vector<64x32xbf16>
    %cst_49 = arith.constant dense<0.000000e+00> : vector<64x2xf32>
    %114 = tpu.matmul %113, %112, %cst_49 {dimension_numbers = #tpu.dot_dimension_numbers<[1], [0], [0], [1], [0, 0, 1, 1], [], []>} : vector<64x32xbf16>, vector<32x2xbf16>, vector<64x2xf32> -> vector<64x2xf32>
    %115 = arith.addf %111, %114 : vector<64x2xf32>
    %116 = vector.extract_strided_slice %105 {offsets = [0, 4], sizes = [32, 2], strides = [1, 1]} : vector<32x8xbf16> to vector<32x2xbf16>
    %117 = vector.extract_strided_slice %106 {offsets = [128, 0], sizes = [64, 32], strides = [1, 1]} : vector<256x32xbf16> to vector<64x32xbf16>
    %cst_50 = arith.constant dense<0.000000e+00> : vector<64x2xf32>
    %118 = tpu.matmul %117, %116, %cst_50 {dimension_numbers = #tpu.dot_dimension_numbers<[1], [0], [0], [1], [0, 0, 1, 1], [], []>} : vector<64x32xbf16>, vector<32x2xbf16>, vector<64x2xf32> -> vector<64x2xf32>
    %119 = arith.addf %115, %118 : vector<64x2xf32>
    %120 = vector.extract_strided_slice %105 {offsets = [0, 6], sizes = [32, 2], strides = [1, 1]} : vector<32x8xbf16> to vector<32x2xbf16>
    %121 = vector.extract_strided_slice %106 {offsets = [192, 0], sizes = [64, 32], strides = [1, 1]} : vector<256x32xbf16> to vector<64x32xbf16>
    %cst_51 = arith.constant dense<0.000000e+00> : vector<64x2xf32>
    %122 = tpu.matmul %121, %120, %cst_51 {dimension_numbers = #tpu.dot_dimension_numbers<[1], [0], [0], [1], [0, 0, 1, 1], [], []>} : vector<64x32xbf16>, vector<32x2xbf16>, vector<64x2xf32> -> vector<64x2xf32>
    %123 = arith.addf %119, %122 : vector<64x2xf32>
    %c0_52 = arith.constant 0 : index
    %c0_53 = arith.constant 0 : index
    %124 = vector.load %arg11[%c0_52, %c0_53] : memref<64x1xf32, #tpu.memory_space<vmem>>, vector<64x1xf32>
    %125 = vector.broadcast %124 : vector<64x1xf32> to vector<64x2xf32>
    %126 = arith.addf %123, %125 : vector<64x2xf32>
    %cst_54 = arith.constant 0.000000e+00 : f32
    %127 = vector.broadcast %cst_54 : f32 to vector<64x2xf32>
    %128 = arith.maximumf %126, %127 : vector<64x2xf32>
    %c0_55 = arith.constant 0 : index
    %c0_56 = arith.constant 0 : index
    %129 = vector.load %arg12[%c0_55, %c0_56] : memref<64x1xf32, #tpu.memory_space<vmem>>, vector<64x1xf32>
    %130 = vector.broadcast %129 : vector<64x1xf32> to vector<64x2xf32>
    %131 = arith.mulf %128, %130 : vector<64x2xf32>
    %cst_57 = arith.constant dense<0.000000e+00> : vector<2xf32>
    %132 = vector.multi_reduction <add>, %131, %cst_57 [0] : vector<64x2xf32> to vector<2xf32>
    %133 = vector.shape_cast %132 : vector<2xf32> to vector<1x2xf32>
    %c0_58 = arith.constant 0 : index
    %c0_59 = arith.constant 0 : index
    %134 = vector.load %arg13[%c0_58, %c0_59] : memref<1x1xf32, #tpu.memory_space<vmem>>, vector<1x1xf32>
    %135 = vector.broadcast %134 : vector<1x1xf32> to vector<1x2xf32>
    %136 = arith.addf %133, %135 : vector<1x2xf32>
    %c0_60 = arith.constant 0 : index
    %c0_61 = arith.constant 0 : index
    %137 = vector.load %arg14[%c0_60, %c0_61] : memref<1x2xf32, #tpu.memory_space<vmem>>, vector<1x2xf32>
    tpu.vector_store %arg14[%c0_60, %c0_61], %136 {strides = array<i32>} : memref<1x2xf32, #tpu.memory_space<vmem>>, vector<1x2xf32>,
    %138 = vector.shape_cast %136 : vector<1x2xf32> to vector<1x1x2xf32>
    %cst_62 = arith.constant dense<0.000000e+00> : vector<1xf32>
    %139 = vector.multi_reduction <add>, %138, %cst_62 [1, 2] : vector<1x1x2xf32> to vector<1xf32>
    %140 = vector.shape_cast %139 : vector<1xf32> to vector<1x1x1xf32>
    %141 = vector.extract %140[0, 0, 0] : f32 from vector<1x1x1xf32>
    %142 = vector.broadcast %141 : f32 to vector<1x1xf32>
    %cst_63 = arith.constant 2.000000e+00 : f32
    %143 = vector.broadcast %cst_63 : f32 to vector<1x1xf32>
    %144 = arith.divf %142, %143 : vector<1x1xf32>
    %c0_64 = arith.constant 0 : index
    %c0_65 = arith.constant 0 : index
    %145 = vector.load %arg15[%c0_64, %c0_65] : memref<1x1xf32, #tpu.memory_space<vmem>>, vector<1x1xf32>
    tpu.vector_store %arg15[%c0_64, %c0_65], %144 {strides = array<i32>} : memref<1x1xf32, #tpu.memory_space<vmem>>, vector<1x1xf32>,
    return
  }
}

</mosaic_0001>

<bundles_post_ra>
// kernel: discriminator_forward.1
= control target key start
LH: loop header
LB: loop body
LE: loop exit
PB: predicated region body
PF: predicated region fallthrough
CT: control target
= control target key end

     0   :  { %s2653_s0 = inlined_call_operand.vmem [shape: bf16[27,128], index: 0, kind: input, shape index: {}]   ;;  %s2654_s1 = inlined_call_operand.vmem [shape: bf16[8,27], index: 1, kind: input, shape index: {}]   ;;  %s2655_s2 = inlined_call_operand.vmem [shape: f32[8,1], index: 2, kind: input, shape index: {}]   ;;  %s2656_s3 = inlined_call_operand.vmem [shape: bf16[128,288], index: 3, kind: input, shape index: {}]   ;;  %s2657_s4 = inlined_call_operand.vmem [shape: bf16[144,8], index: 4, kind: input, shape index: {}]   ;;  %s2658_s5 = inlined_call_operand.vmem [shape: f32[16,1], index: 5, kind: input, shape index: {}]   ;;  %s2659_s6 = inlined_call_operand.vmem [shape: bf16[32,72], index: 6, kind: input, shape index: {}]   ;;  %s2660_s7 = inlined_call_operand.vmem [shape: bf16[288,16], index: 7, kind: input, shape index: {}]   ;;  %s2661_s8 = inlined_call_operand.vmem [shape: f32[32,1], index: 8, kind: input, shape index: {}]   ;;  %s2662_s9 = inlined_call_operand.vmem [shape: bf16[8,8], index: 9, kind: input, shape index: {}]   ;;  %s2663_s10 = inlined_call_operand.vmem [shape: bf16[256,32], index: 10, kind: input, shape index: {}]   ;;  %s2664_s11 = inlined_call_operand.vmem [shape: f32[64,1], index: 11, kind: input, shape index: {}]   ;;  %s2665_s12 = inlined_call_operand.vmem [shape: f32[64,1], index: 12, kind: input, shape index: {}]   ;;  %s2666_s13 = inlined_call_operand.<no memory space> [shape: f32[1,1], index: 13, kind: input, shape index: {}]   ;;  %s2667_s14 = inlined_call_operand.hbm [shape: f32[1,2], index: 14, kind: output, shape index: {0}]   ;;  %s2668_s15 = inlined_call_operand.hbm [shape: f32[1,1], index: 15, kind: output, shape index: {1}]  }
   0x1   :  { %v21_v0 = vstv %s2666_s13 }
   0x2   :  { %22 = vst [vmem:[#allocation2] sm:$0x1] %v21_v0 }
   0x3   :  { %23 = vsyncpa [#allocation4], 0  ;;  %v1642_v1 = vld [vmem:[%s2653_s0 + $0x8] sm:$0xf]  ;;  %v1968_v2 = vld [vmem:[%s2653_s0 + $0x8] sm:$0x30] }
   0x4   :  { %vm80_vm0 = vcmask 1044480   ;;  %vm81_vm1 = vcmask 1045504   ;;  %v1643_v3 = vor.u32 %v1968_v2, %v1642_v1  ;;  %v2114_v4 = vmov 65535   ;;  %v59_v7 = vld [vmem:[%s2655_s2] sm:$0xff]  ;;  %v1731_v8 = vld [vmem:[%s2656_s3 + $0xa8] sm:$0xf] }
   0x5   :  { %v82_v5 = vsel %vm80_vm0, 4294967295, %v2114_v4  ;;  %v2115_v6 = vmov 0   ;;  %v1991_v9 = vld [vmem:[%s2656_s3 + $0xb0] sm:$0xf0]  ;;  %v1990_v12 = vld [vmem:[%s2656_s3 + $0xac] sm:$0xf] }
   0x6   :  { %2057 = vset.pattern.permute.xlu0 %v2115_v6  ;;  %2058 = vset.pattern.permute.xlu1 %v2115_v6  ;;  %v83_v10 = vsel %vm81_vm1, %v82_v5, 0  ;;  %v1732_v11 = vor.u32 %v1991_v9, %v1731_v8  ;;  %v1733_v13 = vld [vmem:[%s2656_s3 + $0xb4] sm:$0xf0]  ;;  %v1967_v15 = vld [vmem:[%s2653_s0] sm:$0xff]  ;;  %v1739_v17 = vld [vmem:[%s2656_s3 + $0xb0] sm:$0xf] }
   0x7   :  { %62 = vperm.xlu0 %2057, %v59_v7   ;;  %2059 = vset.pattern.permute.xlu2 %v2115_v6  ;;  %v85_v14 = vand.u32 %v1643_v3, %v83_v10  ;;  %v1736_v16 = vor.u32 %v1990_v12, %v1733_v13  ;;  %v1992_v18 = vld [vmem:[%s2656_s3 + $0xb8] sm:$0xf0]  ;;  %v1719_v19 = vld [vmem:[%s2656_s3 + $0x90] sm:$0xf]  ;;  %v1987_v22 = vld [vmem:[%s2656_s3 + $0x94] sm:$0xf] }
   0x8   :  { %262 = vmatpush.bf16.msra.mxu1 %v1732_v11  ;;  %v1740_v20 = vor.u32 %v1992_v18, %v1739_v17  ;;  %v1988_v21 = vld [vmem:[%s2656_s3 + $0x98] sm:$0xf0]  ;;  %v1721_v23 = vld [vmem:[%s2656_s3 + $0x9c] sm:$0xf0]  ;;  %v1727_v26 = vld [vmem:[%s2656_s3 + $0x98] sm:$0xf] }
   0x9   :  { %93 = vmatpush.bf16.msra.mxu0 %v85_v14  ;;  %275 = vmatpush.bf16.msra.mxu2 %v1736_v16  ;;  %v1720_v24 = vor.u32 %v1988_v21, %v1719_v19  ;;  %v1724_v25 = vor.u32 %v1987_v22, %v1721_v23  ;;  %v1989_v27 = vld [vmem:[%s2656_s3 + $0xa0] sm:$0xf0]  ;;  %v1707_v28 = vld [vmem:[%s2656_s3 + $0x78] sm:$0xf]  ;;  %v1984_v31 = vld [vmem:[%s2656_s3 + $0x7c] sm:$0xf] }
   0xa   :  { %288 = vmatpush.bf16.msra.mxu3 %v1740_v20  ;;  %v1728_v29 = vor.u32 %v1989_v27, %v1727_v26  ;;  %v1985_v30 = vld [vmem:[%s2656_s3 + $0x80] sm:$0xf0]  ;;  %v1709_v32 = vld [vmem:[%s2656_s3 + $0x84] sm:$0xf0]  ;;  %v1715_v33 = vld [vmem:[%s2656_s3 + $0x80] sm:$0xf] }
   0xb   :  { %v1986_v34 = vld [vmem:[%s2656_s3 + $0x88] sm:$0xf0]  ;;  %v54_v35 = vld [vmem:[%s2654_s1] sm:$0xf]  ;;  %v1708_v36 = vor.u32 %v1985_v30, %v1707_v28  ;;  %vm76_vm2 = vcmask 220160   ;;  %v1712_v37 = vor.u32 %v1984_v31, %v1709_v32 }
   0xc   :  { %263 = vmatpush.bf16.msra.mxu1 %v1720_v24  ;;  %v1695_v38 = vld [vmem:[%s2656_s3 + $0x60] sm:$0xf]  ;;  %v1982_v39 = vld [vmem:[%s2656_s3 + $0x68] sm:$0xf0]  ;;  %v1716_v40 = vor.u32 %v1986_v34, %v1715_v33  ;;  %v1981_v41 = vld [vmem:[%s2656_s3 + $0x64] sm:$0xf] }
   0xd   :  { %94 = vmatpush.bf16.msra.mxu0 %v1967_v15  ;;  %276 = vmatpush.bf16.msra.mxu2 %v1724_v25  ;;  %v1697_v42 = vld [vmem:[%s2656_s3 + $0x6c] sm:$0xf0]  ;;  %v1703_v43 = vld [vmem:[%s2656_s3 + $0x68] sm:$0xf]  ;;  %v1983_v44 = vld [vmem:[%s2656_s3 + $0x70] sm:$0xf0]  ;;  %v1696_v45 = vor.u32 %v1982_v39, %v1695_v38 }
   0xe   :  { %289 = vmatpush.bf16.msra.mxu3 %v1728_v29  ;;  %v1700_v46 = vor.u32 %v1981_v41, %v1697_v42  ;;  %v1683_v47 = vld [vmem:[%s2656_s3 + $0x48] sm:$0xf]  ;;  %v1979_v48 = vld [vmem:[%s2656_s3 + $0x50] sm:$0xf0]  ;;  %v1704_v49 = vor.u32 %v1983_v44, %v1703_v43  ;;  %v1978_v50 = vld [vmem:[%s2656_s3 + $0x4c] sm:$0xf] }
   0xf   :  { %v1685_v51 = vld [vmem:[%s2656_s3 + $0x54] sm:$0xf0]  ;;  %v1691_v52 = vld [vmem:[%s2656_s3 + $0x50] sm:$0xf]  ;;  %v1980_v53 = vld [vmem:[%s2656_s3 + $0x58] sm:$0xf0] }
  0x10   :  { %1644 = vmatmul.msk.bf16.vlgmr.msra.gmra.mxu0 %vm76_vm2, %v54_v35  ;;  %264 = vmatpush.bf16.msra.mxu1 %v1708_v36 }
  0x11   :  { %277 = vmatpush.bf16.msra.mxu2 %v1712_v37 }
  0x12   :  { %290 = vmatpush.bf16.msra.mxu3 %v1716_v40 }
  0x13   :  { %24 = vsyncpa [#allocation6], 0  ;;  %v1684_v54 = vor.u32 %v1979_v48, %v1683_v47  ;;  %v1688_v55 = vor.u32 %v1978_v50, %v1685_v51  ;;  %v1671_v56 = vld [vmem:[%s2656_s3 + $0x30] sm:$0xf]  ;;  %v1976_v57 = vld [vmem:[%s2656_s3 + $0x38] sm:$0xf0]  ;;  %v1692_v58 = vor.u32 %v1980_v53, %v1691_v52 }
  0x14   :  { %265 = vmatpush.bf16.msra.mxu1 %v1696_v45  ;;  %v1975_v59 = vld [vmem:[%s2656_s3 + $0x34] sm:$0xf]  ;;  %v1673_v60 = vld [vmem:[%s2656_s3 + $0x3c] sm:$0xf0]  ;;  %v1679_v61 = vld [vmem:[%s2656_s3 + $0x38] sm:$0xf]  ;;  %v1672_v63 = vor.u32 %v1976_v57, %v1671_v56 }
  0x15   :  { %278 = vmatpush.bf16.msra.mxu2 %v1700_v46  ;;  %v1977_v62 = vld [vmem:[%s2656_s3 + $0x40] sm:$0xf0]  ;;  %v1676_v0 = vor.u32 %v1975_v59, %v1673_v60  ;;  %v1659_v1 = vld [vmem:[%s2656_s3 + $0x18] sm:$0xf]  ;;  %v1972_v4 = vld [vmem:[%s2656_s3 + $0x1c] sm:$0xf] }
  0x16   :  { %291 = vmatpush.bf16.msra.mxu3 %v1704_v49  ;;  %v1973_v2 = vld [vmem:[%s2656_s3 + $0x20] sm:$0xf0]  ;;  %v1680_v3 = vor.u32 %v1977_v62, %v1679_v61  ;;  %v1661_v5 = vld [vmem:[%s2656_s3 + $0x24] sm:$0xf0]  ;;  %v1667_v6 = vld [vmem:[%s2656_s3 + $0x20] sm:$0xf] }
  0x17   :  { %v1974_v7 = vld [vmem:[%s2656_s3 + $0x28] sm:$0xf0]  ;;  %v1660_v8 = vor.u32 %v1973_v2, %v1659_v1  ;;  %v1664_v9 = vor.u32 %v1972_v4, %v1661_v5  ;;  %v1647_v11 = vld [vmem:[%s2656_s3] sm:$0xf]  ;;  %v1969_v13 = vld [vmem:[%s2656_s3 + $0x4] sm:$0xf] }
  0x18   :  { %266 = vmatpush.bf16.msra.mxu1 %v1684_v54  ;;  %v1668_v10 = vor.u32 %v1974_v7, %v1667_v6  ;;  %v1970_v12 = vld [vmem:[%s2656_s3 + $0x8] sm:$0xf0]  ;;  %v1649_v15 = vld [vmem:[%s2656_s3 + $0xc] sm:$0xf0]  ;;  %v1655_v16 = vld [vmem:[%s2656_s3 + $0x8] sm:$0xf] }
  0x19   :  { %279 = vmatpush.bf16.msra.mxu2 %v1688_v55  ;;  %v1648_v14 = vor.u32 %v1970_v12, %v1647_v11  ;;  %v1971_v17 = vld [vmem:[%s2656_s3 + $0x10] sm:$0xf0]  ;;  %v1652_v18 = vor.u32 %v1969_v13, %v1649_v15  ;;  %s2116_s3 = smov 32   ;;  %s2117_s17 = smov 64   ;;  %vm335_vm3 = vcmask 1043456   ;;  %v1994_v46 = vld [vmem:[%s2657_s4 + $0x8] sm:$0xff] }
  0x1a   :  { %292 = vmatpush.bf16.msra.mxu3 %v1692_v58  ;;  %v1656_v19 = vor.u32 %v1971_v17, %v1655_v16  ;;  %s2118_s2 = smov 96   ;;  %v1995_v43 = vld [vmem:[%s2657_s4 + $0x10] sm:$0xff]  ;;  %vm331_vm4 = vcmask 64512   ;;  %v2000_v49 = vld [vmem:[%s2657_s4 + $0x38] sm:$0xff]  ;;  %v1997_v55 = vld [vmem:[%s2657_s4 + $0x20] sm:$0xff]  ;;  %vm612_vm5 = vcmask 261120  }
  0x1b   :  { %v1999_v54 = vld [vmem:[%s2657_s4 + $0x30] sm:$0xff]  ;;  %v1993_v56 = vld [vmem:[%s2657_s4] sm:$0xff]  ;;  %v580_v60 = vld [vmem:[%s2658_s5 + $0x8] sm:$0xff]  ;;  %s2121_s24 = smov 120   ;;  %s2122_s25 = smov 80   ;;  %vm686_vm6 = vcmask 130048  }
  0x1c   :  { %267 = vmatpush.bf16.msra.mxu1 %v1672_v63  ;;  %v579_v59 = vld [vmem:[%s2658_s5] sm:$0xff]  ;;  %v1996_v62 = vld [vmem:[%s2657_s4 + $0x18] sm:$0xff]  ;;  %v1998_v63 = vld [vmem:[%s2657_s4 + $0x28] sm:$0xff]  ;;  %s2123_s13 = smov 88   ;;  %s2124_s27 = smov 72   ;;  %vm1551_vm7 = vcmask 15360  }
  0x1d   :  { %280 = vmatpush.bf16.msra.mxu2 %v1676_v0  ;;  %v2001_v61 = vld [vmem:[%s2657_s4 + $0x40] sm:$0xff]  ;;  %v2003_v6 = vld [vmem:[%s2659_s6 + $0x8] sm:$0xff]  ;;  %s2119_s4 = smov 104   ;;  %s2127_s28 = smov 124   ;;  %vm1581_vm8 = vcmask 8192   ;;  %vm1602_vm10 = vcmask 0  }
  0x1e   :  { %293 = vmatpush.bf16.msra.mxu3 %v1680_v3 }
  0x20   :  { %268 = vmatpush.bf16.msra.mxu1 %v1660_v8 }
  0x21   :  { %281 = vmatpush.bf16.msra.mxu2 %v1664_v9  ;;  %v2002_v9 = vld [vmem:[%s2659_s6] sm:$0xff]  ;;  %s2120_s6 = smov 112  }
  0x22   :  { %294 = vmatpush.bf16.msra.mxu3 %v1668_v10 }
  0x24   :  { %269 = vmatpush.bf16.msra.mxu1 %v1648_v14 }
  0x25   :  { %282 = vmatpush.bf16.msra.mxu2 %v1652_v18 }
  0x26   :  { %295 = vmatpush.bf16.msra.mxu3 %v1656_v19 }
  0x79   :  { %v63_v20 = vpop.permute.xlu0 %62 }
  0x8d   :  { %v96_v21 = vpop.f32.mrf.mxu0 }
  0x8e   :  { %v97_v22 = vadd.f32 %v96_v21, %v63_v20 }
  0x90   :  { %v100_v23 = vmax.f32 %v97_v22, 0.0 }
  0x92   :  { %v101_v24 = vpack.c.bf16 %v100_v23, %v100_v23 }
  0x94   :  { %270 = vmatmul.bf16.vlgmr.msra.gmra.mxu1 %v101_v24  ;;  %283 = vmatmul.bf16.vlgmr.msra.gmra.mxu2 %v101_v24 }
  0x95   :  { %296 = vmatmul.bf16.vlgmr.msra.gmra.mxu3 %v101_v24  ;;  %v98_v25 = vpop.f32.mrf.mxu0 }
 0x111   :  { %v271_v26 = vpop.f32.mrf.mxu1 }
 0x117   :  { %v284_v27 = vpop.f32.mrf.mxu2 }
 0x118   :  { %v301_v28 = vpack.c.bf16 %v284_v27, %v271_v26  ;;  %v297_v29 = vpop.f32.mrf.mxu3 }
 0x119   :  { %v273_v30 = vpop.f32.mrf.mxu1  ;;  %v302_v40 = vpack.c.bf16 %v297_v29, %v297_v29 }
 0x11a   :  { %v441_v31 = vunpack.c.h.b16 %v301_v28  ;;  %v327_v32 = vunpack.c.l.b16 %v301_v28  ;;  %v362_v47 = vsel %vm335_vm3, %v301_v28, 0 }
 0x11b   :  { %v561_v48 = vsel %vm335_vm3, %v302_v40, 0 }
 0x11c   :  { %v442_v33 = vpack.c.b16 %v441_v31, %v441_v31  ;;  %v328_v34 = vpack.c.b16 %v327_v32, %v327_v32 }
 0x11e   :  { %528 = vrot.lane.b32.xlu2 %v442_v33, %s2116_s3  ;;  %383 = vrot.lane.b32.xlu1 %v328_v34, %s2117_s17  ;;  %v447_v45 = vsel %vm335_vm3, %v442_v33, 0 }
 0x11f   :  { %329 = vrot.lane.b32.xlu0 %v328_v34, %s2118_s2  ;;  %v286_v35 = vpop.f32.mrf.mxu2 }
 0x120   :  { %v299_v36 = vpop.f32.mrf.mxu3 }
 0x126   :  { %470 = vrot.lane.b32.xlu2 %v442_v33, %s2118_s2  ;;  %412 = vrot.lane.b32.xlu1 %v328_v34, %s2116_s3 }
 0x127   :  { %499 = vrot.lane.b32.xlu0 %v442_v33, %s2117_s17 }
 0x12e   :  { %583 = vperm.xlu1 %2058, %v579_v59   ;;  %588 = vperm.xlu2 %2059, %v580_v60   ;;  %v2008_v60 = vld [vmem:[%s2660_s7 + $0x20] sm:$0xff] }
 0x178   :  { %v529_v37 = vpop.permute.xlu2 %528 }
 0x179   :  { %v534_v38 = vsel %vm335_vm3, %v529_v37, 0 }
 0x17a   :  { %543 = vmatpush.bf16.msrb.mxu2 %v534_v38 }
 0x17d   :  { %1780 = vmatmul.msk.bf16.vlgmr.msrb.gmra.mxu2 %vm331_vm4, %v2000_v49 }
 0x180   :  { %v471_v57 = vpop.permute.xlu2 %470 }
 0x181   :  { %v476_v58 = vsel %vm335_vm3, %v471_v57, 0  ;;  %v2005_v57 = vld [vmem:[%s2660_s7 + $0x8] sm:$0xff] }
 0x188   :  { %v589_v36 = vpop.permute.xlu2 %588 }
 0x190   :  { %v384_v39 = vpop.permute.xlu1 %383 }
 0x191   :  { %v330_v41 = vpop.permute.xlu0 %329  ;;  %v389_v42 = vsel %vm335_vm3, %v384_v39, 0 }
 0x192   :  { %v337_v44 = vsel %vm335_vm3, %v330_v41, 0  ;;  %398 = vmatpush.bf16.msrb.mxu3 %v389_v42 }
 0x193   :  { %346 = vmatpush.bf16.msrb.mxu0 %v337_v44 }
 0x195   :  { %1755 = vmatmul.msk.bf16.vlgmr.msrb.gmra.mxu3 %vm331_vm4, %v1995_v43 }
 0x196   :  { %456 = vmatpush.bf16.msra.mxu3 %v447_v45  ;;  %1745 = vmatmul.msk.bf16.vlgmr.msrb.gmra.mxu0 %vm331_vm4, %v1994_v46 }
 0x197   :  { %371 = vmatpush.bf16.msra.mxu0 %v362_v47 }
 0x198   :  { %v413_v50 = vpop.permute.xlu1 %412 }
 0x199   :  { %v418_v51 = vsel %vm335_vm3, %v413_v50, 0  ;;  %v500_v52 = vpop.permute.xlu0 %499  ;;  %v1042_v50 = vld [vmem:[%s2661_s8] sm:$0xff] }
 0x19a   :  { %570 = vmatpush.bf16.msrb.mxu3 %v561_v48  ;;  %v505_v53 = vsel %vm335_vm3, %v500_v52, 0  ;;  %v1044_v52 = vld [vmem:[%s2661_s8 + $0x10] sm:$0xff] }
 0x19b   :  { %427 = vmatpush.bf16.msrb.mxu0 %v418_v51  ;;  %514 = vmatpush.bf16.msrb.mxu1 %v505_v53  ;;  %v1045_v51 = vld [vmem:[%s2661_s8 + $0x18] sm:$0xff]  ;;  %v1043_v53 = vld [vmem:[%s2661_s8 + $0x8] sm:$0xff]  ;;  %s1622_s8 = sshll.u32 %s2668_s15, 4  ;;  %s1623_s8 = int_to_ptr.hbm [resolvable:$true] %s1622_s8 }
 0x19e   :  { %1775 = vmatmul.msk.bf16.vlgmr.msrb.gmra.mxu1 %vm331_vm4, %v1999_v54  ;;  %v2004_v54 = vld [vmem:[%s2660_s7] sm:$0xff] }
 0x1a0   :  { %v584_v33 = vpop.permute.xlu1 %583 }
 0x1a5   :  { %1765 = vmatmul.msk.bf16.vlgmr.msra.gmra.mxu3 %vm331_vm4, %v1997_v55 }
 0x1a6   :  { %1750 = vmatmul.msk.bf16.vlgmr.msra.gmra.mxu0 %vm331_vm4, %v1993_v56  ;;  %v2010_v56 = vld [vmem:[%s2660_s7 + $0x30] sm:$0xff] }
 0x1a7   :  { %485 = vmatpush.bf16.msra.mxu0 %v476_v58  ;;  %v2011_v58 = vld [vmem:[%s2660_s7 + $0x38] sm:$0xff] }
 0x1b5   :  { %1785 = vmatmul.msk.bf16.vlgmr.msrb.gmra.mxu3 %vm331_vm4, %v2001_v61 }
 0x1b6   :  { %1760 = vmatmul.msk.bf16.vlgmr.msrb.gmra.mxu0 %vm331_vm4, %v1996_v62 }
 0x1b7   :  { %622 = vmatpush.bf16.msrb.mxu0 %v2003_v6  ;;  %v2007_v6 = vld [vmem:[%s2660_s7 + $0x18] sm:$0xff] }
 0x1bb   :  { %623 = vmatpush.bf16.msrb.mxu0 %v2002_v9  ;;  %v2016_v9 = vld [vmem:[%s2660_s7 + $0x60] sm:$0xff] }
 0x1c6   :  { %1770 = vmatmul.msk.bf16.vlgmr.msra.gmra.mxu0 %vm331_vm4, %v1998_v63  ;;  %v2006_v63 = vld [vmem:[%s2660_s7 + $0x10] sm:$0xff] }
 0x200   :  { %v545_v21 = vpop.f32.mrf.mxu2 }
 0x208   :  { %v547_v32 = vpop.f32.mrf.mxu2 }
 0x213   :  { %v348_v0 = vpop.f32.mrf.mxu0 }
 0x218   :  { %v400_v2 = vpop.f32.mrf.mxu3 }
 0x21b   :  { %v350_v1 = vpop.f32.mrf.mxu0  ;;  %v516_v17 = vpop.f32.mrf.mxu1 }
 0x220   :  { %v402_v4 = vpop.f32.mrf.mxu3 }
 0x223   :  { %v373_v3 = vpop.f32.mrf.mxu0  ;;  %v518_v29 = vpop.f32.mrf.mxu1 }
 0x224   :  { %v374_v10 = vadd.f32 %v373_v3, %v348_v0 }
 0x226   :  { %v405_v12 = vadd.f32 %v400_v2, %v374_v10  ;;  %v2012_v10 = vld [vmem:[%s2660_s7 + $0x40] sm:$0xff] }
 0x228   :  { %v458_v7 = vpop.f32.mrf.mxu3 }
 0x22b   :  { %v375_v5 = vpop.f32.mrf.mxu0 }
 0x22c   :  { %v376_v15 = vadd.f32 %v375_v5, %v350_v1  ;;  %v2014_v1 = vld [vmem:[%s2660_s7 + $0x50] sm:$0xff] }
 0x22e   :  { %v406_v19 = vadd.f32 %v402_v4, %v376_v15  ;;  %v2009_v4 = vld [vmem:[%s2660_s7 + $0x28] sm:$0xff] }
 0x22f   :  { %v2021_v15 = vld [vmem:[%s2660_s7 + $0x88] sm:$0xff] }
 0x230   :  { %v460_v13 = vpop.f32.mrf.mxu3 }
 0x233   :  { %v429_v8 = vpop.f32.mrf.mxu0 }
 0x234   :  { %v434_v14 = vadd.f32 %v429_v8, %v405_v12  ;;  %v2015_v8 = vld [vmem:[%s2660_s7 + $0x58] sm:$0xff]  ;;  %v2017_v12 = vld [vmem:[%s2660_s7 + $0x68] sm:$0xff] }
 0x236   :  { %v463_v16 = vadd.f32 %v458_v7, %v434_v14  ;;  %v2018_v7 = vld [vmem:[%s2660_s7 + $0x70] sm:$0xff]  ;;  %v2020_v14 = vld [vmem:[%s2660_s7 + $0x80] sm:$0xff] }
 0x238   :  { %v572_v24 = vpop.f32.mrf.mxu3 }
 0x23b   :  { %v431_v11 = vpop.f32.mrf.mxu0 }
 0x23c   :  { %v435_v22 = vadd.f32 %v431_v11, %v406_v19  ;;  %v2019_v11 = vld [vmem:[%s2660_s7 + $0x78] sm:$0xff] }
 0x23e   :  { %v464_v26 = vadd.f32 %v460_v13, %v435_v22  ;;  %v2013_v13 = vld [vmem:[%s2660_s7 + $0x48] sm:$0xff] }
 0x240   :  { %v574_v35 = vpop.f32.mrf.mxu3 }
 0x243   :  { %v487_v18 = vpop.f32.mrf.mxu0 }
 0x244   :  { %v492_v20 = vadd.f32 %v487_v18, %v463_v16 }
 0x246   :  { %v521_v23 = vadd.f32 %v516_v17, %v492_v20 }
 0x248   :  { %v550_v25 = vadd.f32 %v545_v21, %v521_v23 }
 0x24a   :  { %v577_v30 = vadd.f32 %v572_v24, %v550_v25 }
 0x24b   :  { %v489_v27 = vpop.f32.mrf.mxu0 }
 0x24c   :  { %v493_v28 = vadd.f32 %v489_v27, %v464_v26  ;;  %v591_v37 = vadd.f32 %v584_v33, %v577_v30 }
 0x24e   :  { %v522_v31 = vadd.f32 %v518_v29, %v493_v28  ;;  %v593_v40 = vmax.f32 %v591_v37, 0.0 }
 0x250   :  { %v551_v34 = vadd.f32 %v547_v32, %v522_v31 }
 0x252   :  { %v578_v38 = vadd.f32 %v574_v35, %v551_v34  ;;  %v1076_v34 = vld [vmem:[%s2662_s9] sm:$0xf]  ;;  %s2125_s9 = smov 126  }
 0x253   :  { %v1084_v35 = vsel %vm335_vm3, %v1076_v34, 0 }
 0x254   :  { %v592_v39 = vadd.f32 %v589_v36, %v578_v38 }
 0x256   :  { %v594_v41 = vmax.f32 %v592_v39, 0.0 }
 0x258   :  { %v595_v42 = vpack.c.bf16 %v594_v41, %v593_v40 }
 0x25a   :  { %1794 = vmatmul.msk.bf16.vlgmr.msrb.gmra.mxu0 %vm612_vm5, %v595_v42 }
 0x2d7   :  { %v625_v43 = vpop.f32.mrf.mxu0 }
 0x2d8   :  { %v630_v44 = vpack.c.bf16 %v625_v43, %v625_v43 }
 0x2da   :  { %v680_v47 = vunpack.c.l.b16 %v630_v44 }
 0x2df   :  { %v627_v45 = vpop.f32.mrf.mxu0 }
 0x2e0   :  { %v631_v46 = vpack.c.bf16 %v627_v45, %v627_v45 }
 0x2e2   :  { %v681_v48 = vunpack.c.l.b16 %v631_v46 }
 0x2e4   :  { %v682_v49 = vpack.c.b16 %v681_v48, %v680_v47 }
 0x2e6   :  { %800 = vrot.lane.b32.xlu2 %v682_v49, %s2119_s4  ;;  %758 = vrot.lane.b32.xlu1 %v682_v49, %s2120_s6 }
 0x2e7   :  { %683 = vrot.lane.b32.xlu0 %v682_v49, %s2121_s24  ;;  %736 = vmatpush.bf16.msra.mxu2 %v682_v49 }
 0x2ea   :  { %1813 = vmatmul.msk.bf16.vlgmr.msra.gmra.mxu2 %vm686_vm6, %v2004_v54 }
 0x2ee   :  { %926 = vrot.lane.b32.xlu2 %v682_v49, %s2122_s25  ;;  %884 = vrot.lane.b32.xlu1 %v682_v49, %s2123_s13  ;;  %s2126_s25 = smov 122  }
 0x2ef   :  { %842 = vrot.lane.b32.xlu0 %v682_v49, %s2118_s2 }
 0x2f6   :  { %1048 = vperm.xlu2 %2059, %v1042_v50   ;;  %1010 = vrot.lane.b32.xlu1 %v682_v49, %s2117_s17  ;;  %s1611_s17 = sshll.u32 %s2667_s14, 4  ;;  %s2130_s14 = smov [#allocation5]   ;;  %s1612_s17 = int_to_ptr.hbm [resolvable:$true] %s1611_s17 }
 0x2f7   :  { %968 = vrot.lane.b32.xlu0 %v682_v49, %s2124_s27  ;;  %s1620_s19 = sshll.u32 %s2130_s14, 4  ;;  %s1621_s19 = int_to_ptr.vmem [resolvable:$true] %s1620_s19 }
 0x2fa   :  { %1814 = vmatmul.msk.bf16.gmra.mxu2 %vm686_vm6, %v2005_v57 }
 0x2fe   :  { %1063 = vperm.xlu2 %2059, %v1045_v51   ;;  %1058 = vperm.xlu1 %2058, %v1044_v52  }
 0x2ff   :  { %1053 = vperm.xlu0 %2057, %v1043_v53  }
 0x340   :  { %v801_v55 = vpop.permute.xlu2 %800 }
 0x341   :  { %816 = vmatpush.bf16.msra.mxu0 %v801_v55 }
 0x344   :  { %1833 = vmatmul.msk.bf16.vlgmr.msra.gmra.mxu0 %vm686_vm6, %v2010_v56 }
 0x348   :  { %v927_v61 = vpop.permute.xlu2 %926 }
 0x354   :  { %1834 = vmatmul.msk.bf16.gmra.mxu0 %vm686_vm6, %v2011_v58 }
 0x358   :  { %v759_v59 = vpop.permute.xlu1 %758 }
 0x359   :  { %v684_v62 = vpop.permute.xlu0 %683  ;;  %774 = vmatpush.bf16.msra.mxu3 %v759_v59 }
 0x35a   :  { %700 = vmatpush.bf16.msra.mxu1 %v684_v62 }
 0x35c   :  { %1823 = vmatmul.msk.bf16.vlgmr.msra.gmra.mxu3 %vm686_vm6, %v2008_v60 }
 0x35d   :  { %942 = vmatpush.bf16.msrb.mxu3 %v927_v61  ;;  %1803 = vmatmul.msk.bf16.vlgmr.msra.gmra.mxu1 %vm686_vm6, %v2006_v63 }
 0x360   :  { %v885_v0 = vpop.permute.xlu1 %884 }
 0x361   :  { %v843_v2 = vpop.permute.xlu0 %842  ;;  %900 = vmatpush.bf16.msrb.mxu2 %v885_v0 }
 0x362   :  { %858 = vmatpush.bf16.msrb.mxu1 %v843_v2 }
 0x364   :  { %1853 = vmatmul.msk.bf16.vlgmr.msrb.gmra.mxu2 %vm686_vm6, %v2014_v1 }
 0x365   :  { %1093 = vmatpush.bf16.msra.mxu2 %v1084_v35 }
 0x368   :  { %v1011_v3 = vpop.permute.xlu1 %1010 }
 0x369   :  { %v969_v5 = vpop.permute.xlu0 %968  ;;  %1026 = vmatpush.bf16.msra.mxu1 %v1011_v3  ;;  %v1049_v3 = vpop.permute.xlu2 %1048 }
 0x36a   :  { %984 = vmatpush.bf16.msrb.mxu0 %v969_v5 }
 0x36c   :  { %1824 = vmatmul.msk.bf16.gmra.mxu3 %vm686_vm6, %v2009_v4 }
 0x36d   :  { %1804 = vmatmul.msk.bf16.gmra.mxu1 %vm686_vm6, %v2007_v6  ;;  %1873 = vmatmul.msk.bf16.vlgmr.msrb.gmra.mxu0 %vm686_vm6, %v2018_v7  ;;  %v738_v18 = vpop.f32.mrf.mxu2 }
 0x374   :  { %1854 = vmatmul.msk.bf16.gmra.mxu2 %vm686_vm6, %v2015_v8  ;;  %v1054_v8 = vpop.permute.xlu0 %1053 }
 0x375   :  { %v740_v22 = vpop.f32.mrf.mxu2 }
 0x37c   :  { %1863 = vmatmul.msk.bf16.vlgmr.msrb.gmra.mxu3 %vm686_vm6, %v2016_v9 }
 0x37d   :  { %1843 = vmatmul.msk.bf16.vlgmr.msrb.gmra.mxu1 %vm686_vm6, %v2012_v10  ;;  %1874 = vmatmul.msk.bf16.gmra.mxu0 %vm686_vm6, %v2019_v11  ;;  %v743_v26 = vpop.f32.mrf.mxu2 }
 0x385   :  { %v745_v30 = vpop.f32.mrf.mxu2 }
 0x38c   :  { %1864 = vmatmul.msk.bf16.gmra.mxu3 %vm686_vm6, %v2017_v12 }
 0x38d   :  { %1844 = vmatmul.msk.bf16.gmra.mxu1 %vm686_vm6, %v2013_v13 }
 0x39d   :  { %1883 = vmatmul.msk.bf16.vlgmr.msra.gmra.mxu1 %vm686_vm6, %v2020_v14 }
 0x3ad   :  { %1884 = vmatmul.msk.bf16.gmra.mxu1 %vm686_vm6, %v2021_v15 }
 0x3c1   :  { %v818_v20 = vpop.f32.mrf.mxu0 }
 0x3c9   :  { %v820_v24 = vpop.f32.mrf.mxu0 }
 0x3d1   :  { %v823_v29 = vpop.f32.mrf.mxu0 }
 0x3d9   :  { %v825_v33 = vpop.f32.mrf.mxu0 }
 0x3da   :  { %v702_v16 = vpop.f32.mrf.mxu1 }
 0x3db   :  { %v739_v38 = vadd.f32 %v738_v18, %v702_v16 }
 0x3df   :  { %v776_v19 = vpop.f32.mrf.mxu3 }
 0x3e0   :  { %v786_v40 = vadd.f32 %v776_v19, %v739_v38 }
 0x3e2   :  { %v704_v17 = vpop.f32.mrf.mxu1  ;;  %v828_v43 = vadd.f32 %v818_v20, %v786_v40 }
 0x3e3   :  { %v741_v41 = vadd.f32 %v740_v22, %v704_v17 }
 0x3e7   :  { %v778_v23 = vpop.f32.mrf.mxu3  ;;  %v902_v36 = vpop.f32.mrf.mxu2 }
 0x3e8   :  { %v787_v44 = vadd.f32 %v778_v23, %v741_v41 }
 0x3ea   :  { %v707_v21 = vpop.f32.mrf.mxu1  ;;  %v986_v42 = vpop.f32.mrf.mxu0  ;;  %v829_v48 = vadd.f32 %v820_v24, %v787_v44 }
 0x3eb   :  { %v744_v55 = vadd.f32 %v743_v26, %v707_v21 }
 0x3ef   :  { %v781_v27 = vpop.f32.mrf.mxu3  ;;  %v904_v47 = vpop.f32.mrf.mxu2 }
 0x3f0   :  { %v788_v57 = vadd.f32 %v781_v27, %v744_v55  ;;  %v1059_v27 = vpop.permute.xlu1 %1058  ;;  %v1437_v55 = vld [vmem:[%s2664_s11 + $0x30] sm:$0xff] }
 0x3f2   :  { %v709_v25 = vpop.f32.mrf.mxu1  ;;  %v988_v53 = vpop.f32.mrf.mxu0  ;;  %v830_v0 = vadd.f32 %v823_v29, %v788_v57  ;;  %v1434_v57 = vld [vmem:[%s2664_s11 + $0x18] sm:$0xff] }
 0x3f3   :  { %v746_v61 = vadd.f32 %v745_v30, %v709_v25 }
 0x3f7   :  { %v783_v31 = vpop.f32.mrf.mxu3  ;;  %v907_v60 = vpop.f32.mrf.mxu2 }
 0x3f8   :  { %v789_v1 = vadd.f32 %v783_v31, %v746_v61  ;;  %v1064_v31 = vpop.permute.xlu2 %1063  ;;  %v1573_v61 = vld [vmem:[#allocation2] sm:$0x1] }
 0x3fa   :  { %v860_v28 = vpop.f32.mrf.mxu1  ;;  %v991_v9 = vpop.f32.mrf.mxu0  ;;  %v831_v10 = vadd.f32 %v825_v33, %v789_v1  ;;  %v1438_v1 = vld [vmem:[%s2664_s11 + $0x38] sm:$0xff] }
 0x3fb   :  { %v870_v46 = vadd.f32 %v860_v28, %v828_v43 }
 0x3fd   :  { %v912_v50 = vadd.f32 %v902_v36, %v870_v46 }
 0x3ff   :  { %v944_v39 = vpop.f32.mrf.mxu3  ;;  %v909_v16 = vpop.f32.mrf.mxu2 }
 0x400   :  { %v954_v52 = vadd.f32 %v944_v39, %v912_v50 }
 0x402   :  { %v862_v32 = vpop.f32.mrf.mxu1  ;;  %v996_v58 = vadd.f32 %v986_v42, %v954_v52  ;;  %v993_v24 = vpop.f32.mrf.mxu0  ;;  %v1497_v52 = vld [vmem:[%s2665_s12 + $0x10] sm:$0xff] }
 0x403   :  { %v871_v51 = vadd.f32 %v862_v32, %v829_v48 }
 0x405   :  { %v913_v56 = vadd.f32 %v904_v47, %v871_v51  ;;  %v1495_v51 = vld [vmem:[%s2665_s12] sm:$0xff] }
 0x407   :  { %v946_v49 = vpop.f32.mrf.mxu3 }
 0x408   :  { %v955_v59 = vadd.f32 %v946_v49, %v913_v56  ;;  %v1432_v49 = vld [vmem:[%s2664_s11 + $0x8] sm:$0xff] }
 0x409   :  { %v1496_v56 = vld [vmem:[%s2665_s12 + $0x8] sm:$0xff] }
 0x40a   :  { %v865_v37 = vpop.f32.mrf.mxu1  ;;  %v997_v2 = vadd.f32 %v988_v53, %v955_v59  ;;  %v1433_v53 = vld [vmem:[%s2664_s11 + $0x10] sm:$0xff]  ;;  %v1436_v59 = vld [vmem:[%s2664_s11 + $0x28] sm:$0xff] }
 0x40b   :  { %v872_v5 = vadd.f32 %v865_v37, %v830_v0  ;;  %v1501_v0 = vld [vmem:[%s2665_s12 + $0x30] sm:$0xff] }
 0x40d   :  { %v914_v12 = vadd.f32 %v907_v60, %v872_v5  ;;  %v1435_v60 = vld [vmem:[%s2664_s11 + $0x20] sm:$0xff] }
 0x40f   :  { %v949_v63 = vpop.f32.mrf.mxu3 }
 0x410   :  { %v956_v17 = vadd.f32 %v949_v63, %v914_v12  ;;  %v1498_v63 = vld [vmem:[%s2665_s12 + $0x18] sm:$0xff]  ;;  %v2035_v12 = vld [vmem:[%s2663_s10 + $0x68] sm:$0xff] }
 0x412   :  { %v867_v45 = vpop.f32.mrf.mxu1  ;;  %v998_v22 = vadd.f32 %v991_v9, %v956_v17  ;;  %v2025_v17 = vld [vmem:[%s2663_s10 + $0x18] sm:$0xff] }
 0x413   :  { %v873_v13 = vadd.f32 %v867_v45, %v831_v10  ;;  %v2026_v10 = vld [vmem:[%s2663_s10 + $0x20] sm:$0xff] }
 0x415   :  { %v915_v21 = vadd.f32 %v909_v16, %v873_v13  ;;  %v2027_v16 = vld [vmem:[%s2663_s10 + $0x28] sm:$0xff] }
 0x417   :  { %v951_v19 = vpop.f32.mrf.mxu3 }
 0x418   :  { %v957_v23 = vadd.f32 %v951_v19, %v915_v21  ;;  %v2031_v19 = vld [vmem:[%s2663_s10 + $0x48] sm:$0xff]  ;;  %v2037_v21 = vld [vmem:[%s2663_s10 + $0x78] sm:$0xff] }
 0x41a   :  { %v1028_v54 = vpop.f32.mrf.mxu1  ;;  %v999_v26 = vadd.f32 %v993_v24, %v957_v23  ;;  %v2029_v23 = vld [vmem:[%s2663_s10 + $0x38] sm:$0xff] }
 0x41b   :  { %v1038_v62 = vadd.f32 %v1028_v54, %v996_v58  ;;  %v1431_v54 = vld [vmem:[%s2664_s11] sm:$0xff]  ;;  %v1500_v58 = vld [vmem:[%s2665_s12 + $0x28] sm:$0xff]  ;;  %v2033_v24 = vld [vmem:[%s2663_s10 + $0x58] sm:$0xff] }
 0x41d   :  { %v1066_v6 = vadd.f32 %v1049_v3, %v1038_v62  ;;  %v1499_v62 = vld [vmem:[%s2665_s12 + $0x20] sm:$0xff] }
 0x41e   :  { %v2022_v3 = vld [vmem:[%s2663_s10] sm:$0xff] }
 0x41f   :  { %v1070_v14 = vmax.f32 %v1066_v6, 0.0  ;;  %v2023_v6 = vld [vmem:[%s2663_s10 + $0x8] sm:$0xff] }
 0x422   :  { %v1030_v4 = vpop.f32.mrf.mxu1 }
 0x423   :  { %v1039_v7 = vadd.f32 %v1030_v4, %v997_v2  ;;  %v1502_v2 = vld [vmem:[%s2665_s12 + $0x38] sm:$0xff] }
 0x425   :  { %v1067_v11 = vadd.f32 %v1054_v8, %v1039_v7  ;;  %v2034_v8 = vld [vmem:[%s2663_s10 + $0x60] sm:$0xff] }
 0x427   :  { %v1071_v15 = vmax.f32 %v1067_v11, 0.0  ;;  %v2024_v11 = vld [vmem:[%s2663_s10 + $0x10] sm:$0xff] }
 0x429   :  { %v1074_v18 = vpack.c.bf16 %v1071_v15, %v1070_v14  ;;  %v2030_v15 = vld [vmem:[%s2663_s10 + $0x40] sm:$0xff] }
 0x42a   :  { %v1033_v20 = vpop.f32.mrf.mxu1 }
 0x42b   :  { %1885 = vmatmul.msk.bf16.vlgmr.msra.gmra.mxu2 %vm331_vm4, %v1074_v18  ;;  %v1040_v25 = vadd.f32 %v1033_v20, %v998_v22  ;;  %v2036_v18 = vld [vmem:[%s2663_s10 + $0x70] sm:$0xff] }
 0x42c   :  { %v2028_v20 = vld [vmem:[%s2663_s10 + $0x30] sm:$0xff] }
 0x42d   :  { %v1068_v29 = vadd.f32 %v1059_v27, %v1040_v25  ;;  %v2032_v22 = vld [vmem:[%s2663_s10 + $0x50] sm:$0xff]  ;;  %s2128_s10 = smov [#allocation3]  }
 0x42e   :  { %s1609_s11 = sshll.u32 %s2128_s10, 4  ;;  %s1610_s11 = int_to_ptr.vmem [resolvable:$true] %s1609_s11 }
 0x42f   :  { %v1072_v33 = vmax.f32 %v1068_v29, 0.0 }
 0x432   :  { %v1035_v28 = vpop.f32.mrf.mxu1 }
 0x433   :  { %v1041_v30 = vadd.f32 %v1035_v28, %v999_v26 }
 0x435   :  { %v1069_v32 = vadd.f32 %v1064_v31, %v1041_v30 }
 0x437   :  { %v1073_v34 = vmax.f32 %v1069_v32, 0.0 }
 0x439   :  { %v1075_v35 = vpack.c.bf16 %v1073_v34, %v1072_v33 }
 0x43b   :  { %1886 = vmatmul.msk.bf16.gmra.mxu2 %vm331_vm4, %v1075_v35 }
 0x4ae   :  { %v1095_v36 = vpop.f32.mrf.mxu2 }
 0x4af   :  { %v1105_v37 = vpack.c.bf16 %v1095_v36, %v1095_v36 }
 0x4b1   :  { %v1165_v40 = vunpack.c.l.b16 %v1105_v37 }
 0x4b6   :  { %v1097_v38 = vpop.f32.mrf.mxu2 }
 0x4b7   :  { %v1106_v39 = vpack.c.bf16 %v1097_v38, %v1097_v38 }
 0x4b9   :  { %v1166_v41 = vunpack.c.l.b16 %v1106_v39 }
 0x4bb   :  { %v1169_v42 = vpack.c.b16 %v1166_v41, %v1165_v40 }
 0x4bd   :  { %1171 = vrot.lane.b32.xlu1 %v1169_v42, %s2125_s9 }
 0x4be   :  { %v1100_v43 = vpop.f32.mrf.mxu2 }
 0x4bf   :  { %v1107_v44 = vpack.c.bf16 %v1100_v43, %v1100_v43 }
 0x4c1   :  { %v1167_v47 = vunpack.c.l.b16 %v1107_v44 }
 0x4c5   :  { %1376 = vrot.lane.b32.xlu1 %v1169_v42, %s2126_s25 }
 0x4c6   :  { %v1102_v45 = vpop.f32.mrf.mxu2 }
 0x4c7   :  { %v1108_v46 = vpack.c.bf16 %v1102_v45, %v1102_v45 }
 0x4c9   :  { %v1168_v48 = vunpack.c.l.b16 %v1108_v46 }
 0x4cb   :  { %v1170_v50 = vpack.c.b16 %v1168_v48, %v1167_v47 }
 0x4cd   :  { %1446 = vperm.xlu1 %2058, %v1432_v49   ;;  %1378 = vrot.lane.b32.xlu2 %v1170_v50, %s2126_s25 }
 0x4ce   :  { %1173 = vrot.lane.b32.xlu0 %v1170_v50, %s2125_s9  ;;  %1258 = vmatpush.bf16.msra.mxu0 %v1170_v50 }
 0x4d2   :  { %1259 = vmatpush.bf16.msra.mxu0 %v1169_v42 }
 0x4d5   :  { %1505 = vperm.xlu1 %2058, %v1495_v51   ;;  %1301 = vrot.lane.b32.xlu2 %v1169_v42, %s2127_s28 }
 0x4d6   :  { %1303 = vrot.lane.b32.xlu0 %v1170_v50, %s2127_s28  ;;  %1923 = vmatmul.msk.bf16.vlgmr.msra.gmra.mxu0 %vm612_vm5, %v2022_v3 }
 0x4dd   :  { %1515 = vperm.xlu1 %2058, %v1497_v52   ;;  %1451 = vperm.xlu2 %2059, %v1433_v53  }
 0x4de   :  { %1441 = vperm.xlu0 %2057, %v1431_v54  }
 0x4e5   :  { %1471 = vperm.xlu1 %2058, %v1437_v55   ;;  %1510 = vperm.xlu2 %2059, %v1496_v56  }
 0x4e6   :  { %1456 = vperm.xlu0 %2057, %v1434_v57   ;;  %1924 = vmatmul.msk.bf16.gmra.mxu0 %vm612_vm5, %v2023_v6 }
 0x4ed   :  { %1530 = vperm.xlu1 %2058, %v1500_v58   ;;  %1466 = vperm.xlu2 %2059, %v1436_v59  }
 0x4ee   :  { %1461 = vperm.xlu0 %2057, %v1435_v60  }
 0x4f5   :  { %1576 = vperm.xlu1 %2058, %v1573_v61   ;;  %1525 = vperm.xlu2 %2059, %v1499_v62  }
 0x4f6   :  { %1520 = vperm.xlu0 %2057, %v1498_v63   ;;  %1925 = vmatmul.msk.bf16.gmra.mxu0 %vm612_vm5, %v2024_v11 }
 0x4fd   :  { %1535 = vperm.xlu2 %2059, %v1501_v0  }
 0x4fe   :  { %1476 = vperm.xlu0 %2057, %v1438_v1  }
 0x506   :  { %1540 = vperm.xlu0 %2057, %v1502_v2   ;;  %1926 = vmatmul.msk.bf16.gmra.mxu0 %vm612_vm5, %v2025_v17 }
 0x527   :  { %v1379_v4 = vpop.permute.xlu2 %1378 }
 0x528   :  { %1400 = vmatpush.bf16.msrb.mxu2 %v1379_v4 }
 0x52f   :  { %v1172_v5 = vpop.permute.xlu1 %1171  ;;  %v1302_v14 = vpop.permute.xlu2 %1301 }
 0x537   :  { %v1377_v7 = vpop.permute.xlu1 %1376  ;;  %v1452_v40 = vpop.permute.xlu2 %1451 }
 0x538   :  { %1401 = vmatpush.bf16.msrb.mxu2 %v1377_v7 }
 0x53b   :  { %1963 = vmatmul.msk.bf16.vlgmr.msrb.gmra.mxu2 %vm612_vm5, %v2034_v8 }
 0x53f   :  { %v1447_v38 = vpop.permute.xlu1 %1446  ;;  %v1511_v47 = vpop.permute.xlu2 %1510 }
 0x540   :  { %v1174_v9 = vpop.permute.xlu0 %1173 }
 0x541   :  { %1195 = vmatpush.bf16.msra.mxu3 %v1174_v9 }
 0x545   :  { %1196 = vmatpush.bf16.msra.mxu3 %v1172_v5 }
 0x547   :  { %v1506_v46 = vpop.permute.xlu1 %1505  ;;  %v1467_v62 = vpop.permute.xlu2 %1466 }
 0x548   :  { %1903 = vmatmul.msk.bf16.vlgmr.msra.gmra.mxu3 %vm612_vm5, %v2026_v10  ;;  %v1304_v13 = vpop.permute.xlu0 %1303 }
 0x549   :  { %1325 = vmatpush.bf16.msrb.mxu1 %v1304_v13 }
 0x54b   :  { %1964 = vmatmul.msk.bf16.gmra.mxu2 %vm612_vm5, %v2035_v12 }
 0x54d   :  { %1326 = vmatpush.bf16.msrb.mxu1 %v1302_v14 }
 0x54f   :  { %v1516_v61 = vpop.permute.xlu1 %1515 }
 0x550   :  { %1943 = vmatmul.msk.bf16.vlgmr.msrb.gmra.mxu1 %vm612_vm5, %v2030_v15  ;;  %v1442_v35 = vpop.permute.xlu0 %1441 }
 0x553   :  { %v1261_v25 = vpop.f32.mrf.mxu0 }
 0x558   :  { %1904 = vmatmul.msk.bf16.gmra.mxu3 %vm612_vm5, %v2027_v16  ;;  %v1457_v43 = vpop.permute.xlu0 %1456 }
 0x55b   :  { %1965 = vmatmul.msk.bf16.gmra.mxu2 %vm612_vm5, %v2036_v18  ;;  %v1263_v27 = vpop.f32.mrf.mxu0 }
 0x560   :  { %1944 = vmatmul.msk.bf16.gmra.mxu1 %vm612_vm5, %v2031_v19  ;;  %v1462_v54 = vpop.permute.xlu0 %1461  ;;  %v1472_v19 = vpop.permute.xlu1 %1471 }
 0x563   :  { %v1266_v31 = vpop.f32.mrf.mxu0 }
 0x568   :  { %1905 = vmatmul.msk.bf16.gmra.mxu3 %vm612_vm5, %v2028_v20  ;;  %v1521_v12 = vpop.permute.xlu0 %1520 }
 0x56b   :  { %1966 = vmatmul.msk.bf16.gmra.mxu2 %vm612_vm5, %v2037_v21  ;;  %v1268_v37 = vpop.f32.mrf.mxu0 }
 0x570   :  { %1945 = vmatmul.msk.bf16.gmra.mxu1 %vm612_vm5, %v2032_v22  ;;  %v1526_v22 = vpop.permute.xlu2 %1525 }
 0x573   :  { %v1271_v45 = vpop.f32.mrf.mxu0 }
 0x578   :  { %1906 = vmatmul.msk.bf16.gmra.mxu3 %vm612_vm5, %v2029_v23 }
 0x57b   :  { %v1273_v58 = vpop.f32.mrf.mxu0 }
 0x580   :  { %1946 = vmatmul.msk.bf16.gmra.mxu1 %vm612_vm5, %v2033_v24 }
 0x583   :  { %v1276_v15 = vpop.f32.mrf.mxu0 }
 0x5be   :  { %v1403_v26 = vpop.f32.mrf.mxu2 }
 0x5c6   :  { %v1405_v29 = vpop.f32.mrf.mxu2 }
 0x5cb   :  { %v1198_v28 = vpop.f32.mrf.mxu3 }
 0x5cc   :  { %v1262_v50 = vadd.f32 %v1261_v25, %v1198_v28 }
 0x5cd   :  { %v1328_v30 = vpop.f32.mrf.mxu1 }
 0x5ce   :  { %v1408_v34 = vpop.f32.mrf.mxu2  ;;  %v1348_v57 = vadd.f32 %v1328_v30, %v1262_v50 }
 0x5d0   :  { %v1423_v1 = vadd.f32 %v1403_v26, %v1348_v57 }
 0x5d2   :  { %v1479_v11 = vadd.f32 %v1442_v35, %v1423_v1 }
 0x5d3   :  { %v1200_v32 = vpop.f32.mrf.mxu3 }
 0x5d4   :  { %v1264_v49 = vadd.f32 %v1263_v27, %v1200_v32  ;;  %v1487_v20 = vmax.f32 %v1479_v11, 0.0 }
 0x5d5   :  { %v1330_v33 = vpop.f32.mrf.mxu1 }
 0x5d6   :  { %v1410_v41 = vpop.f32.mrf.mxu2  ;;  %v1349_v55 = vadd.f32 %v1330_v33, %v1264_v49  ;;  %v1543_v32 = vmul.f32 %v1506_v46, %v1487_v20  ;;  %v1531_v46 = vpop.permute.xlu1 %1530 }
 0x5d8   :  { %v1424_v63 = vadd.f32 %v1405_v29, %v1349_v55 }
 0x5da   :  { %v1480_v8 = vadd.f32 %v1447_v38, %v1424_v63 }
 0x5db   :  { %v1203_v36 = vpop.f32.mrf.mxu3 }
 0x5dc   :  { %v1267_v52 = vadd.f32 %v1266_v31, %v1203_v36  ;;  %v1488_v16 = vmax.f32 %v1480_v8, 0.0  ;;  %v1477_v36 = vpop.permute.xlu0 %1476 }
 0x5dd   :  { %v1333_v39 = vpop.f32.mrf.mxu1 }
 0x5de   :  { %v1413_v48 = vpop.f32.mrf.mxu2  ;;  %v1350_v59 = vadd.f32 %v1333_v39, %v1267_v52  ;;  %v1544_v28 = vmul.f32 %v1511_v47, %v1488_v16 }
 0x5e0   :  { %v1425_v4 = vadd.f32 %v1408_v34, %v1350_v59 }
 0x5e2   :  { %v1481_v13 = vadd.f32 %v1452_v40, %v1425_v4 }
 0x5e3   :  { %v1205_v42 = vpop.f32.mrf.mxu3 }
 0x5e4   :  { %v1269_v56 = vadd.f32 %v1268_v37, %v1205_v42  ;;  %v1489_v23 = vmax.f32 %v1481_v13, 0.0  ;;  %v1553_v37 = vsel %vm1551_vm7, %v1544_v28, 0.0 }
 0x5e5   :  { %v1335_v44 = vpop.f32.mrf.mxu1 }
 0x5e6   :  { %v1351_v0 = vadd.f32 %v1335_v44, %v1269_v56  ;;  %v1415_v3 = vpop.f32.mrf.mxu2  ;;  %v1545_v33 = vmul.f32 %v1516_v61, %v1489_v23 }
 0x5e8   :  { %v1426_v9 = vadd.f32 %v1410_v41, %v1351_v0  ;;  %v1552_v41 = vsel %vm1551_vm7, %v1543_v32, 0.0  ;;  %v1555_v44 = vsel %vm1551_vm7, %v1545_v33, 0.0 }
 0x5e9   :  { %v1554_v49 = vadd.f32 %v1553_v37, %v1552_v41 }
 0x5ea   :  { %v1482_v17 = vadd.f32 %v1457_v43, %v1426_v9  ;;  %v1278_v43 = vpop.f32.mrf.mxu0 }
 0x5eb   :  { %v1208_v51 = vpop.f32.mrf.mxu3  ;;  %v1556_v55 = vadd.f32 %v1555_v44, %v1554_v49 }
 0x5ec   :  { %v1272_v60 = vadd.f32 %v1271_v45, %v1208_v51  ;;  %v1490_v29 = vmax.f32 %v1482_v17, 0.0 }
 0x5ed   :  { %v1338_v53 = vpop.f32.mrf.mxu1 }
 0x5ee   :  { %v1352_v5 = vadd.f32 %v1338_v53, %v1272_v60  ;;  %v1418_v27 = vpop.f32.mrf.mxu2  ;;  %v1546_v38 = vmul.f32 %v1521_v12, %v1490_v29  ;;  %v1577_v12 = vpop.permute.xlu1 %1576 }
 0x5f0   :  { %v1427_v14 = vadd.f32 %v1413_v48, %v1352_v5  ;;  %v1557_v51 = vsel %vm1551_vm7, %v1546_v38, 0.0 }
 0x5f1   :  { %v1558_v60 = vadd.f32 %v1557_v51, %v1556_v55 }
 0x5f2   :  { %v1483_v24 = vadd.f32 %v1462_v54, %v1427_v14  ;;  %v1536_v54 = vpop.permute.xlu2 %1535  ;;  %v1579_v14 = vperm.slane %v1577_v12, 0 }
 0x5f3   :  { %v1210_v2 = vpop.f32.mrf.mxu3 }
 0x5f4   :  { %v1274_v6 = vadd.f32 %v1273_v58, %v1210_v2  ;;  %v1491_v34 = vmax.f32 %v1483_v24, 0.0  ;;  %v1541_v2 = vpop.permute.xlu0 %1540 }
 0x5f5   :  { %v1340_v7 = vpop.f32.mrf.mxu1 }
 0x5f6   :  { %v1353_v10 = vadd.f32 %v1340_v7, %v1274_v6  ;;  %v1547_v45 = vmul.f32 %v1526_v22, %v1491_v34  ;;  %v1420_v56 = vpop.f32.mrf.mxu2 }
 0x5f8   :  { %v1428_v18 = vadd.f32 %v1415_v3, %v1353_v10  ;;  %v1559_v57 = vsel %vm1551_vm7, %v1547_v45, 0.0 }
 0x5f9   :  { %v1560_v63 = vadd.f32 %v1559_v57, %v1558_v60 }
 0x5fa   :  { %v1484_v30 = vadd.f32 %v1467_v62, %v1428_v18 }
 0x5fb   :  { %v1213_v21 = vpop.f32.mrf.mxu3 }
 0x5fc   :  { %v1277_v25 = vadd.f32 %v1276_v15, %v1213_v21  ;;  %v1492_v39 = vmax.f32 %v1484_v30, 0.0 }
 0x5fd   :  { %v1343_v26 = vpop.f32.mrf.mxu1 }
 0x5fe   :  { %v1354_v31 = vadd.f32 %v1343_v26, %v1277_v25  ;;  %v1548_v52 = vmul.f32 %v1531_v46, %v1492_v39  ;;  %v2129_v25 = vmov 2.0  }
 0x5ff   :  { %2060 = vrcp.f32 %v2129_v25 }
 0x600   :  { %v1429_v35 = vadd.f32 %v1418_v27, %v1354_v31  ;;  %v1561_v61 = vsel %vm1551_vm7, %v1548_v52, 0.0 }
 0x601   :  { %v1562_v3 = vadd.f32 %v1561_v61, %v1560_v63 }
 0x602   :  { %v1485_v40 = vadd.f32 %v1472_v19, %v1429_v35 }
 0x603   :  { %v1215_v42 = vpop.f32.mrf.mxu3 }
 0x604   :  { %v1493_v47 = vmax.f32 %v1485_v40, 0.0  ;;  %v1279_v48 = vadd.f32 %v1278_v43, %v1215_v42 }
 0x605   :  { %v1345_v50 = vpop.f32.mrf.mxu1  ;;  %v2061_v26 = vpop.eup %2060 }
 0x606   :  { %v1355_v53 = vadd.f32 %v1345_v50, %v1279_v48  ;;  %v1549_v58 = vmul.f32 %v1536_v54, %v1493_v47  ;;  %v1595_v27 = vmul.f32 2.0, %v2061_v26  ;;  %vm1599_vm9 = vweird.f32 %v2061_v26 }
 0x608   :  { %v1430_v59 = vadd.f32 %v1420_v56, %v1355_v53  ;;  %v1563_v0 = vsel %vm1551_vm7, %v1549_v58, 0.0  ;;  %v1596_v28 = vsub.f32 1.0, %v1595_v27 }
 0x609   :  { %v1564_v5 = vadd.f32 %v1563_v0, %v1562_v3 }
 0x60a   :  { %v1486_v62 = vadd.f32 %v1477_v36, %v1430_v59  ;;  %v1597_v29 = vmul.f32 %v2061_v26, %v1596_v28 }
 0x60c   :  { %v1494_v1 = vmax.f32 %v1486_v62, 0.0  ;;  %v1598_v30 = vadd.f32 %v2061_v26, %v1597_v29 }
 0x60e   :  { %v1550_v4 = vmul.f32 %v1541_v2, %v1494_v1  ;;  %v1600_v31 = vsel %vm1599_vm9, %v2061_v26, %v1598_v30 }
 0x610   :  { %v1565_v6 = vsel %vm1551_vm7, %v1550_v4, 0.0 }
 0x611   :  { %v1566_v7 = vadd.f32 %v1565_v6, %v1564_v5 }
 0x613   :  { %v1567_v8 = vrot.slane %v1566_v7, 4 }
 0x615   :  { %v1568_v9 = vadd.f32 %v1567_v8, %v1566_v7 }
 0x617   :  { %v1569_v10 = vrot.slane %v1568_v9, 2 }
 0x619   :  { %v1570_v11 = vadd.f32 %v1569_v10, %v1568_v9 }
 0x61b   :  { %v1571_v13 = vrot.slane %v1570_v11, 1 }
 0x61d   :  { %v1572_v15 = vadd.f32 %v1571_v13, %v1570_v11 }
 0x61f   :  { %v1580_v16 = vadd.f32 %v1579_v14, %v1572_v15 }
 0x621   :  { %v1583_v17 = vsel %vm1581_vm8, %v1580_v16, 0.0  ;;  %1582 = vst.msk [vmem:[#allocation3] sm:$0x1] %vm1581_vm8, %v1580_v16 }
 0x622   :  { %1584 = vadd.xlane.f32.xlu2 %v1583_v17  ;;  %1614 = dma.vmem_to_hbm [thread:$0]  %s1610_s11, 16, %s1612_s17, [#allocation4]  }
 0x695   :  { %v1585_v18 = vpop.xlane.xlu2 %1584 }
 0x696   :  { %v1586_v19 = vrot.slane %v1585_v18, 4 }
 0x698   :  { %v1587_v20 = vadd.f32 %v1586_v19, %v1585_v18 }
 0x69a   :  { %v1588_v21 = vrot.slane %v1587_v20, 2 }
 0x69c   :  { %v1589_v22 = vadd.f32 %v1588_v21, %v1587_v20 }
 0x69e   :  { %v1590_v23 = vrot.slane %v1589_v22, 1 }
 0x6a0   :  { %v1591_v24 = vadd.f32 %v1590_v23, %v1589_v22 }
 0x6a2   :  { %2038 = vpush %v1591_v24 }
 0x6d3   :  { %s2039_s21 = spop %2038 }
 0x6d4   :  { %v1593_v32 = vstv %s2039_s21 }
 0x6d5   :  { %v1601_v33 = vmul.f32 %v1600_v31, %v1593_v32 }
 0x6d7   :  { %1603 = vst.msk [vmem:[#allocation5] sm:$0x1] %vm1602_vm10, %v1601_v33 }
 0x6d8   :  { %1625 = dma.vmem_to_hbm [thread:$0]  %s1621_s19, 16, %s1623_s8, [#allocation6]  }
 0x6d9   :  { %2110 = dma.done.wait [#allocation4], 16  }
 0x6da   :  { %2111 = vsyncadd [#allocation4], 4294967280 }
 0x6db   :  { %2112 = dma.done.wait [#allocation6], 16  }
 0x6dc   :  { %2113 = vsyncadd [#allocation6], 4294967280 }
 0x6dd   :  { %1634 = vsyncpa [#allocation4], 1 }
 0x6de   :  { %1635 = vsyncpa [#allocation6], 1 }

</bundles_post_ra>
